<compile_context>
chip_gen: v7x
topology: tpu7x:2x2x1
jax: 0.10.0
libtpu: 0.0.40
codegen_flags: <defaults>
</compile_context>

<pallas_src>
import jax
import jax.numpy as jnp
import numpy as np
from jax import lax
from jax.experimental import pallas as pl
from jax.experimental.pallas import tpu as pltpu


def ga_kernel(src_ref, trg_ref, pg_ref, st_ref, sel_ref, shift_ref, out_ref, acc_ref):
    """One (node-tile, edge-tile) grid step of the graph-attention aggregation.

    pg_ref  : [N, HFo+2H] bf16 resident slab [proj | s_src | ones]
    st_ref  : [TN, H]     bf16 s_trg tile for this node tile
    sel_ref : [H, HFo+2H] f32 per-head lane selector
    acc_ref : [TN, HFo+2H] f32 accumulator [sum att*proj | junk | softmax denom]
    """
    f32 = jnp.float32
    bf16 = jnp.bfloat16
    N = pg_ref.shape[0]
    C = pg_ref.shape[1]            # HFo + 2*H
    H = st_ref.shape[1]
    HFo = C - 2 * H
    TN = out_ref.shape[0]
    TE = src_ref.shape[1]

    nt = pl.program_id(0)          # node-tile index ("parallel")
    et = pl.program_id(1)          # edge-tile index ("arbitrary" reduction axis)

    @pl.when(et == 0)
    def _init():
        acc_ref[...] = jnp.zeros_like(acc_ref)

    # ---- one-hot tiles from lane-major edge indices (sentinel N => all-zero column) ----
    src_idx = src_ref[...]                                               # [1, TE] int32
    trg_idx = trg_ref[...]                                               # [1, TE] int32
    node_iota = lax.broadcasted_iota(jnp.int32, (N, TE), 0)
    src_oh = (node_iota == src_idx).astype(bf16)                         # [N, TE]
    tile_iota = lax.broadcasted_iota(jnp.int32, (TN, TE), 0) + nt * TN
    trg_oh = (tile_iota == trg_idx).astype(bf16)                         # [TN, TE] (gather+scatter)

    # ---- fused gathers on the MXU (bf16 in, f32 accumulate) ----------------------------
    tn_dims = (((0,), (0,)), ((), ()))          # contract over the node axis (transposed lhs)
    lift = lax.dot_general(src_oh, pg_ref[...], tn_dims,
                           preferred_element_type=f32)                   # [TE, C] = [proj|s_src|1]
    stl = lax.dot_general(trg_oh, st_ref[...], tn_dims,
                          preferred_element_type=f32)                    # [TE, H] s_trg (tile-local)

    # ---- scores: LeakyReLU + fixed-shift exp -------------------------------------------
    scores = lift[:, HFo:HFo + H] + stl                                  # [TE, H]
    scores = jnp.where(scores > 0, scores, 0.2 * scores)                 # LeakyReLU(0.2)
    exp_s = jnp.exp(scores - shift_ref[...])                             # [TE, H], args <= 0

    # ---- per-head broadcast via selector matmul; scatter input built with one multiply --
    exp_ext = jnp.dot(exp_s, sel_ref[...], preferred_element_type=f32)   # [TE, C]
    scat_in = (lift * exp_ext).astype(bf16)                              # [att*proj | 0 | exp]

    # ---- fused scatter-add of (weighted features | softmax denominators) ---------------
    acc_ref[...] += jnp.dot(trg_oh, scat_in, preferred_element_type=f32)  # [TN, C]

    # ---- finalize: exact per-node normalization; lane-dense store ----------------------
    @pl.when(et == pl.num_programs(1) - 1)
    def _finish():
        acc = acc_ref[...]
        inv = 1.0 / (acc[:, HFo + H:] + 1e-16)                           # [TN, H]
        inv_b = jnp.dot(inv, sel_ref[...], preferred_element_type=f32)[:, :HFo]
        out_ref[...] = acc[:, :HFo] * inv_b                              # [TN, HFo]


def ga_layer_forward(x, edge_index, local_emb, W, a_src, a_trg, bias,
                     *, edge_tile=256, node_tile=None):
    """x:[N,F_in], edge_index:[2,E] int32, local_emb:[N,F_loc],
       W:[F_in,H*Fo], a_src/a_trg:[H,Fo], bias:[H*(Fo+F_loc)]."""
    N, F_in = x.shape
    H, Fo = a_src.shape
    HFo = H * Fo
    Floc = local_emb.shape[1]
    C = HFo + 2 * H
    E = edge_index.shape[1]

    x = x.astype(jnp.float32)
    W = W.astype(jnp.float32)

    # Projection + per-head scores hoisted out of the kernel (one XLA GEMM, computed once;
    # avoids redundant x@W per node tile and the per-head XLU reductions in-kernel).
    proj = jnp.dot(x, W)                                                  # [N, HFo]
    proj_h = proj.reshape(N, H, Fo)
    s_src = jnp.sum(proj_h * a_src[None].astype(jnp.float32), axis=-1)    # [N, H]
    s_trg = jnp.sum(proj_h * a_trg[None].astype(jnp.float32), axis=-1)    # [N, H]

    # Fixed softmax shift: upper bound on every LeakyReLU(score) => exp args <= 0.
    # Softmax is shift-invariant, so the result matches the reference up to fp rounding.
    shift = jnp.maximum(jnp.max(s_src) + jnp.max(s_trg), 0.0).reshape(1, 1).astype(jnp.float32)

    # Resident slab (bf16 MXU operand): [proj | s_src | ones]. The trailing ones lanes turn
    # the single VPU multiply by the broadcast exp into the softmax denominator columns.
    pg = jnp.concatenate(
        [proj, s_src, jnp.ones((N, H), jnp.float32)], axis=1).astype(jnp.bfloat16)   # [N, C]
    st = s_trg.astype(jnp.bfloat16)                                                  # [N, H]

    # Per-head lane selector: sel[h, h*Fo:(h+1)*Fo] = 1 and sel[h, HFo+H+h] = 1.
    sel_np = np.zeros((H, C), np.float32)
    for h in range(H):
        sel_np[h, h * Fo:(h + 1) * Fo] = 1.0
        sel_np[h, HFo + H + h] = 1.0
    sel = jnp.asarray(sel_np)

    TE = edge_tile
    ET = int(pl.cdiv(E, TE))
    E_pad = ET * TE
    if node_tile is None:
        # NT >= 2 so the "parallel" axis shards across v7x's two TensorCores when possible.
        node_tile = N // 2 if (N % 2 == 0 and (N // 2) % 8 == 0) else N
    TN = node_tile
    assert N % TN == 0 and (TN == N or TN % 8 == 0)
    NT = N // TN

    # Pad the edge list with sentinel index N: matches no node => zero contribution.
    pad = E_pad - E
    src = jnp.concatenate([edge_index[0].astype(jnp.int32),
                           jnp.full((pad,), N, jnp.int32)]).reshape(1, E_pad)
    trg = jnp.concatenate([edge_index[1].astype(jnp.int32),
                           jnp.full((pad,), N, jnp.int32)]).reshape(1, E_pad)

    agg = pl.pallas_call(
        ga_kernel,
        out_shape=jax.ShapeDtypeStruct((N, HFo), jnp.float32),
        grid_spec=pltpu.PrefetchScalarGridSpec(
            num_scalar_prefetch=0,
            grid=(NT, ET),
            in_specs=[
                pl.BlockSpec((1, TE), lambda nt, e: (0, e)),      # src indices (lane-major)
                pl.BlockSpec((1, TE), lambda nt, e: (0, e)),      # trg indices (lane-major)
                pl.BlockSpec((N, C), lambda nt, e: (0, 0)),       # [proj | s_src | ones] (resident)
                pl.BlockSpec((TN, H), lambda nt, e: (nt, 0)),     # s_trg tile
                pl.BlockSpec((H, C), lambda nt, e: (0, 0)),       # per-head selector
                pl.BlockSpec((1, 1), lambda nt, e: (0, 0)),       # softmax shift
            ],
            out_specs=pl.BlockSpec((TN, HFo), lambda nt, e: (nt, 0)),
            scratch_shapes=[pltpu.VMEM((TN, C), jnp.float32)],    # [agg | junk | denom]
        ),
        compiler_params=pltpu.CompilerParams(
            # nt axis shards across TensorCores (v7x megacore); et carries the accumulator.
            dimension_semantics=("parallel", "arbitrary"),
            vmem_limit_bytes=48 * 1024 * 1024,   # <= v7x's 64 MiB physical; tiny working set here
        ),
    )(src, trg, pg, st, sel, shift)

    # Lane-dense XLA epilogue: per-head [agg_h | local] interleave, bias, ELU.
    res = jnp.broadcast_to(local_emb.astype(jnp.float32)[:, None, :], (N, H, Floc))
    full = jnp.concatenate([agg.reshape(N, H, Fo), res], axis=2).reshape(N, H * (Fo + Floc))
    full = full + bias.astype(jnp.float32)
    out = jnp.where(full > 0, full, jnp.expm1(full))                      # ELU(alpha=1)
    return out, edge_index, local_emb


def ref_forward(x, edge_index, local_emb, W, a_src, a_trg, bias):
    """Pure-JAX f32 reference mirroring the PyTorch semantics (mask=False path)."""
    N = x.shape[0]
    H, Fo = a_src.shape
    src, trg = edge_index[0], edge_index[1]
    proj = (x @ W).reshape(N, H, Fo)
    s_src = (proj * a_src[None]).sum(-1)                  # [N, H]
    s_trg = (proj * a_trg[None]).sum(-1)                  # [N, H]
    scores = jax.nn.leaky_relu(s_src[src] + s_trg[trg], 0.2)
    scores = scores - scores.max()
    exp_s = jnp.exp(scores)
    denom = jnp.zeros((N, H), jnp.float32).at[trg].add(exp_s)
    att = exp_s / (denom[trg] + 1e-16)                    # [E, H]
    weighted = proj[src] * att[:, :, None]                # [E, H, Fo]
    out = jnp.zeros((N, H, Fo), jnp.float32).at[trg].add(weighted)
    res = jnp.broadcast_to(local_emb[:, None, :], (N, H, local_emb.shape[1]))
    out = jnp.concatenate([out, res], axis=2).reshape(N, -1) + bias
    return jnp.where(out > 0, out, jnp.exp(out) - 1.0)


if __name__ == "__main__":
    # Small shapes consistent with the module (H=2 is required by the residual concat).
    N, F_in, H, Fo, E = 64, 16, 2, 16, 200
    Floc = F_in

    key = jax.random.PRNGKey(0)
    k_x, k_w, k_as, k_at, k_src, k_trg, k_loc, k_b = jax.random.split(key, 8)

    x = jax.random.normal(k_x, (N, F_in), jnp.float32)
    local_emb = jax.random.normal(k_loc, (N, Floc), jnp.float32)
    edge_index = jnp.stack([
        jax.random.randint(k_src, (E,), 0, N, jnp.int32),
        jax.random.randint(k_trg, (E,), 0, N, jnp.int32),
    ], axis=0)

    def xavier(k, shape, fan_in, fan_out):
        bound = float(np.sqrt(6.0 / (fan_in + fan_out)))
        return jax.random.uniform(k, shape, jnp.float32, -bound, bound)

    W = xavier(k_w, (F_in, H * Fo), F_in, H * Fo)         # linear_proj.weight.T
    a_src = xavier(k_as, (H, Fo), Fo, H)                  # scoring_fn_source [1,H,Fo] -> [H,Fo]
    a_trg = xavier(k_at, (H, Fo), Fo, H)                  # scoring_fn_target
    bias = 0.1 * jax.random.normal(k_b, (H * (Fo + Floc),), jnp.float32)

    out, _, _ = ga_layer_forward(x, edge_index, local_emb, W, a_src, a_trg, bias)
    out = jax.block_until_ready(out)

    ref = ref_forward(x, edge_index, local_emb, W, a_src, a_trg, bias)
    # Tolerance reflects the intentional bf16 MXU operands (proj / scores rounded to bf16);
    # the gather/scatter one-hots and the final division are exact.
    np.testing.assert_allclose(np.asarray(out), np.asarray(ref), rtol=2e-2, atol=3e-2)
    print("KERNEL_OK")
</pallas_src>

<mosaic_0001>
module attributes {stable_mosaic.version = 11 : i64} {
  func.func @ga_kernel(%arg0: i32, %arg1: i32, %arg2: memref<1x256xi32, #tpu.memory_space<vmem>>, %arg3: memref<1x256xi32, #tpu.memory_space<vmem>>, %arg4: memref<64x36xbf16, #tpu.memory_space<vmem>>, %arg5: memref<32x2xbf16, #tpu.memory_space<vmem>>, %arg6: memref<2x36xf32, #tpu.memory_space<vmem>>, %arg7: memref<1x1xf32, #tpu.memory_space<vmem>>, %arg8: memref<32x32xf32, #tpu.memory_space<vmem>>, %arg9: memref<32x36xf32, #tpu.memory_space<vmem>>) attributes {dimension_semantics = [#tpu.dimension_semantics<parallel>, #tpu.dimension_semantics<arbitrary>], iteration_bounds = array<i64: 2, 1>, scalar_prefetch = 0 : i64, scratch_operands = 1 : i64, tpu.core_type = #tpu.core_type<tc>, window_params = [{transform_indices = @transform_0, window_bounds = array<i64: 1, 256>}, {transform_indices = @transform_1, window_bounds = array<i64: 1, 256>}, {pipeline_mode = #tpu.pipeline_mode<synchronous>, transform_indices = @transform_2, window_bounds = array<i64: 64, 36>}, {transform_indices = @transform_3, window_bounds = array<i64: 32, 2>}, {pipeline_mode = #tpu.pipeline_mode<synchronous>, transform_indices = @transform_4, window_bounds = array<i64: 2, 36>}, {pipeline_mode = #tpu.pipeline_mode<synchronous>, transform_indices = @transform_5, window_bounds = array<i64: 1, 1>}, {transform_indices = @transform_6, window_bounds = array<i64: 32, 32>}]} {
    %c0_i32 = arith.constant 0 : i32
    %0 = arith.cmpi eq, %arg1, %c0_i32 : i32
    %1 = arith.extui %0 : i1 to i32
    %c0_i32_0 = arith.constant 0 : i32
    %2 = arith.cmpi ne, %1, %c0_i32_0 : i32
    scf.if %2 {
      %cst_23 = arith.constant 0.000000e+00 : f32
      %46 = vector.broadcast %cst_23 : f32 to vector<32x36xf32>
      %c0_24 = arith.constant 0 : index
      %c0_25 = arith.constant 0 : index
      %47 = vector.load %arg9[%c0_24, %c0_25] : memref<32x36xf32, #tpu.memory_space<vmem>>, vector<32x36xf32>
      tpu.vector_store %arg9[%c0_24, %c0_25], %46 {strides = array<i32>} : memref<32x36xf32, #tpu.memory_space<vmem>>, vector<32x36xf32>,
    } else {
    }
    %c0 = arith.constant 0 : index
    %c0_1 = arith.constant 0 : index
    %3 = vector.load %arg2[%c0, %c0_1] : memref<1x256xi32, #tpu.memory_space<vmem>>, vector<1x256xi32>
    %c0_2 = arith.constant 0 : index
    %c0_3 = arith.constant 0 : index
    %4 = vector.load %arg3[%c0_2, %c0_3] : memref<1x256xi32, #tpu.memory_space<vmem>>, vector<1x256xi32>
    %5 = tpu.iota {dimensions = array<i32: 0>} : vector<64x256xi32>
    %6 = vector.broadcast %3 : vector<1x256xi32> to vector<64x256xi32>
    %7 = arith.cmpi eq, %5, %6 : vector<64x256xi32>
    %8 = arith.extui %7 : vector<64x256xi1> to vector<64x256xi32>
    %9 = arith.sitofp %8 : vector<64x256xi32> to vector<64x256xf32>
    %10 = arith.truncf %9 : vector<64x256xf32> to vector<64x256xbf16>
    %11 = tpu.iota {dimensions = array<i32: 0>} : vector<32x256xi32>
    %c32_i32 = arith.constant 32 : i32
    %12 = arith.muli %arg0, %c32_i32 : i32
    %13 = vector.broadcast %12 : i32 to vector<32x256xi32>
    %14 = arith.addi %11, %13 : vector<32x256xi32>
    %15 = vector.broadcast %4 : vector<1x256xi32> to vector<32x256xi32>
    %16 = arith.cmpi eq, %14, %15 : vector<32x256xi32>
    %17 = arith.extui %16 : vector<32x256xi1> to vector<32x256xi32>
    %18 = arith.sitofp %17 : vector<32x256xi32> to vector<32x256xf32>
    %19 = arith.truncf %18 : vector<32x256xf32> to vector<32x256xbf16>
    %c0_4 = arith.constant 0 : index
    %c0_5 = arith.constant 0 : index
    %20 = vector.load %arg4[%c0_4, %c0_5] : memref<64x36xbf16, #tpu.memory_space<vmem>>, vector<64x36xbf16>
    %cst = arith.constant dense<0.000000e+00> : vector<256x36xf32>
    %21 = tpu.matmul %10, %20, %cst {dimension_numbers = #tpu.dot_dimension_numbers<[0], [0], [1], [1], [0, 1, 1, 1], [], []>} : vector<64x256xbf16>, vector<64x36xbf16>, vector<256x36xf32> -> vector<256x36xf32>
    %c0_6 = arith.constant 0 : index
    %c0_7 = arith.constant 0 : index
    %22 = vector.load %arg5[%c0_6, %c0_7] : memref<32x2xbf16, #tpu.memory_space<vmem>>, vector<32x2xbf16>
    %cst_8 = arith.constant dense<0.000000e+00> : vector<256x2xf32>
    %23 = tpu.matmul %19, %22, %cst_8 {dimension_numbers = #tpu.dot_dimension_numbers<[0], [0], [1], [1], [0, 1, 1, 1], [], []>} : vector<32x256xbf16>, vector<32x2xbf16>, vector<256x2xf32> -> vector<256x2xf32>
    %24 = vector.extract_strided_slice %21 {offsets = [0, 32], sizes = [256, 2], strides = [1, 1]} : vector<256x36xf32> to vector<256x2xf32>
    %25 = arith.addf %24, %23 : vector<256x2xf32>
    %cst_9 = arith.constant 0.000000e+00 : f32
    %26 = vector.broadcast %cst_9 : f32 to vector<256x2xf32>
    %27 = arith.cmpf ogt, %25, %26 : vector<256x2xf32>
    %cst_10 = arith.constant 2.000000e-01 : f32
    %28 = vector.broadcast %cst_10 : f32 to vector<256x2xf32>
    %29 = arith.mulf %28, %25 : vector<256x2xf32>
    %30 = arith.select %27, %25, %29 : vector<256x2xi1>, vector<256x2xf32>
    %c0_11 = arith.constant 0 : index
    %c0_12 = arith.constant 0 : index
    %31 = vector.load %arg7[%c0_11, %c0_12] : memref<1x1xf32, #tpu.memory_space<vmem>>, vector<1x1xf32>
    %32 = vector.broadcast %31 : vector<1x1xf32> to vector<256x2xf32>
    %33 = arith.subf %30, %32 : vector<256x2xf32>
    %34 = math.exp %33 : vector<256x2xf32>
    %c0_13 = arith.constant 0 : index
    %c0_14 = arith.constant 0 : index
    %35 = vector.load %arg6[%c0_13, %c0_14] : memref<2x36xf32, #tpu.memory_space<vmem>>, vector<2x36xf32>
    %cst_15 = arith.constant dense<0.000000e+00> : vector<256x36xf32>
    %36 = tpu.matmul %34, %35, %cst_15 {dimension_numbers = #tpu.dot_dimension_numbers<[1], [0], [0], [1], [0, 0, 1, 1], [], []>} : vector<256x2xf32>, vector<2x36xf32>, vector<256x36xf32> -> vector<256x36xf32>
    %37 = arith.mulf %21, %36 : vector<256x36xf32>
    %38 = arith.truncf %37 : vector<256x36xf32> to vector<256x36xbf16>
    %c0_16 = arith.constant 0 : index
    %c0_17 = arith.constant 0 : index
    %39 = vector.load %arg9[%c0_16, %c0_17] : memref<32x36xf32, #tpu.memory_space<vmem>>, vector<32x36xf32>
    %cst_18 = arith.constant dense<0.000000e+00> : vector<32x36xf32>
    %40 = tpu.matmul %19, %38, %cst_18 {dimension_numbers = #tpu.dot_dimension_numbers<[1], [0], [0], [1], [0, 0, 1, 1], [], []>} : vector<32x256xbf16>, vector<256x36xbf16>, vector<32x36xf32> -> vector<32x36xf32>
    %41 = arith.addf %39, %40 : vector<32x36xf32>
    %c0_19 = arith.constant 0 : index
    %c0_20 = arith.constant 0 : index
    %42 = vector.load %arg9[%c0_19, %c0_20] : memref<32x36xf32, #tpu.memory_space<vmem>>, vector<32x36xf32>
    tpu.vector_store %arg9[%c0_19, %c0_20], %41 {strides = array<i32>} : memref<32x36xf32, #tpu.memory_space<vmem>>, vector<32x36xf32>,
    %c0_i32_21 = arith.constant 0 : i32
    %43 = arith.cmpi eq, %arg1, %c0_i32_21 : i32
    %44 = arith.extui %43 : i1 to i32
    %c0_i32_22 = arith.constant 0 : i32
    %45 = arith.cmpi ne, %44, %c0_i32_22 : i32
    scf.if %45 {
      %c0_23 = arith.constant 0 : index
      %c0_24 = arith.constant 0 : index
      %46 = vector.load %arg9[%c0_23, %c0_24] : memref<32x36xf32, #tpu.memory_space<vmem>>, vector<32x36xf32>
      %47 = vector.extract_strided_slice %46 {offsets = [0, 34], sizes = [32, 2], strides = [1, 1]} : vector<32x36xf32> to vector<32x2xf32>
      %cst_25 = arith.constant 1.000000e-16 : f32
      %48 = vector.broadcast %cst_25 : f32 to vector<32x2xf32>
      %49 = arith.addf %47, %48 : vector<32x2xf32>
      %cst_26 = arith.constant 1.000000e+00 : f32
      %50 = vector.broadcast %cst_26 : f32 to vector<32x2xf32>
      %51 = arith.divf %50, %49 : vector<32x2xf32>
      %c0_27 = arith.constant 0 : index
      %c0_28 = arith.constant 0 : index
      %52 = vector.load %arg6[%c0_27, %c0_28] : memref<2x36xf32, #tpu.memory_space<vmem>>, vector<2x36xf32>
      %cst_29 = arith.constant dense<0.000000e+00> : vector<32x36xf32>
      %53 = tpu.matmul %51, %52, %cst_29 {dimension_numbers = #tpu.dot_dimension_numbers<[1], [0], [0], [1], [0, 0, 1, 1], [], []>} : vector<32x2xf32>, vector<2x36xf32>, vector<32x36xf32> -> vector<32x36xf32>
      %54 = vector.extract_strided_slice %53 {offsets = [0, 0], sizes = [32, 32], strides = [1, 1]} : vector<32x36xf32> to vector<32x32xf32>
      %55 = vector.extract_strided_slice %46 {offsets = [0, 0], sizes = [32, 32], strides = [1, 1]} : vector<32x36xf32> to vector<32x32xf32>
      %56 = arith.mulf %55, %54 : vector<32x32xf32>
      %c0_30 = arith.constant 0 : index
      %c0_31 = arith.constant 0 : index
      %57 = vector.load %arg8[%c0_30, %c0_31] : memref<32x32xf32, #tpu.memory_space<vmem>>, vector<32x32xf32>
      tpu.vector_store %arg8[%c0_30, %c0_31], %56 {strides = array<i32>} : memref<32x32xf32, #tpu.memory_space<vmem>>, vector<32x32xf32>,
    } else {
    }
    return
  }
  func.func @transform_0(%arg0: i32, %arg1: i32) -> (i32, i32) {
    %c0_i32 = arith.constant 0 : i32
    %c0_i32_0 = arith.constant 0 : i32
    return %c0_i32, %arg1 : i32, i32
  }
  func.func @transform_1(%arg0: i32, %arg1: i32) -> (i32, i32) {
    %c0_i32 = arith.constant 0 : i32
    %c0_i32_0 = arith.constant 0 : i32
    return %c0_i32, %arg1 : i32, i32
  }
  func.func @transform_2(%arg0: i32, %arg1: i32) -> (i32, i32) {
    %c0_i32 = arith.constant 0 : i32
    %c0_i32_0 = arith.constant 0 : i32
    %c0_i32_1 = arith.constant 0 : i32
    return %c0_i32, %c0_i32_0 : i32, i32
  }
  func.func @transform_3(%arg0: i32, %arg1: i32) -> (i32, i32) {
    %c0_i32 = arith.constant 0 : i32
    %c0_i32_0 = arith.constant 0 : i32
    return %arg0, %c0_i32 : i32, i32
  }
  func.func @transform_4(%arg0: i32, %arg1: i32) -> (i32, i32) {
    %c0_i32 = arith.constant 0 : i32
    %c0_i32_0 = arith.constant 0 : i32
    %c0_i32_1 = arith.constant 0 : i32
    return %c0_i32, %c0_i32_0 : i32, i32
  }
  func.func @transform_5(%arg0: i32, %arg1: i32) -> (i32, i32) {
    %c0_i32 = arith.constant 0 : i32
    %c0_i32_0 = arith.constant 0 : i32
    %c0_i32_1 = arith.constant 0 : i32
    return %c0_i32, %c0_i32_0 : i32, i32
  }
  func.func @transform_6(%arg0: i32, %arg1: i32) -> (i32, i32) {
    %c0_i32 = arith.constant 0 : i32
    %c0_i32_0 = arith.constant 0 : i32
    return %arg0, %c0_i32 : i32, i32
  }
}

</mosaic_0001>

<bundles_post_ra>
// kernel: tpu_custom_call.1
= control target key start
LH: loop header
LB: loop body
LE: loop exit
PB: predicated region body
PF: predicated region fallthrough
CT: control target
= control target key end

     0   :  { %s2592_s23 = smov 0   ;;  %s2594_s24 = smov 0   ;;  %s3075_s0 = inlined_call_operand.vmem [shape: s32[1,256], index: 0, kind: input, shape index: {}]   ;;  %s3076_s1 = inlined_call_operand.vmem [shape: s32[1,256], index: 1, kind: input, shape index: {}]   ;;  %s3077_s2 = inlined_call_operand.vmem [shape: bf16[64,36], index: 2, kind: input, shape index: {}]   ;;  %s3078_s3 = inlined_call_operand.vmem [shape: bf16[64,2], index: 3, kind: input, shape index: {}]   ;;  %s3079_s4 = inlined_call_operand.vmem [shape: f32[2,36], index: 4, kind: input, shape index: {}]   ;;  %s3080_s5 = inlined_call_operand.<no memory space> [shape: f32[1,1], index: 5, kind: input, shape index: {}]   ;;  %s3081_s6 = inlined_call_operand.vmem [shape: f32[64,32], index: 6, kind: output, shape index: {}]  }
   0x1   :  { %v11_v0 = vstv %s3080_s5  ;;  %s2596_s25 = smov 0  }
   0x2   :  { %12 = vst [vmem:[#allocation3] sm:$0x1] %v11_v0 }
   0x3 LB: > { %s30_s5 = sadd.s32 1, %s2542_s24  ;;  %p2060_p0 = scmp.ge.s32.totalorder %s2546_s25, 1  ;;  %s2546_s25 = sphi %s2596_s25, %s18_s25   ;;  %s2542_s24 = sphi %s2594_s24, %s3087_s24   ;;  %s2538_s23 = sphi %s2592_s23, %s3086_s23  }
   0x4   : > { %p32_p1 = scmp.ge.s32.totalorder %s30_s5, 2  ;;  %p247_p2 = scmp.lt.s32.totalorder %s2546_s25, 3 }
   0x6   : > { %s3089_s5 = smov (%p32_p1, %s30_s5), 0  ;;  %p248_p3 = pnand %p2060_p0, %p247_p2 }
   0x7   : > { %v319_v1 = vlaneseq (!%p248_p3)  ;;  %s2081_s26 = sshll.u32 (!%p248_p3), %s2538_s23, 5  ;;  %v318_v2 = vld [vmem:[%s3076_s1] sm:$0x3] (!%p248_p3)  ;;  %s2061_s29 = sshll.u32 (!%p248_p3), %s2538_s23, 2  ;;  %v2548_v17 = vmov (!%p248_p3), 0.0   ;;  %v2449_v61 = vld [vmem:[%s3077_s2 + $0x8] sm:$0xff] (!%p248_p3)  }
   0x8   : > { %251 = sbr.rel (%p248_p3) target bundleno = 1454 (0x5ae), region = 44  ;;  %v393_v3 = vstv (!%p248_p3), %s2081_s26  ;;  %p296_p4 = scmp.lt.s32.totalorder (!%p248_p3), %s2061_s29, 7  ;;  %v317_v33 = vld [vmem:[%s3075_s0] sm:$0x3] (!%p248_p3) }
   0x9   : > { %v2613_v4 = vshrl.u32 (!%p248_p3), %v319_v1, 7  ;;  %v2448_v60 = vld [vmem:[%s3077_s2] sm:$0xff] (!%p248_p3)   ;;  %s2550_s20 = smov (!%p248_p3), 32   ;;  %s2551_s23 = smov (!%p248_p3), 96  }
   0xa   : > { %2281 = vmatprep.subr.bf16.mxu0 (!%p248_p3), %v2448_v60  ;;  %s2553_s28 = smov (!%p248_p3), 94  }
   0xb   : > { %v321_v5 = vadd.s32 (!%p248_p3), 8, %v2613_v4  ;;  %v330_v6 = vsub.s32 (!%p248_p3), 0, %v2613_v4  ;;  %v394_v7 = vadd.s32 (!%p248_p3), %v393_v3, %v2613_v4  ;;  %v2619_v8 = vadd.s32 (!%p248_p3), 16, %v2613_v4  ;;  %2282 = vmatpush3.bf16.msra.mxu0 (!%p248_p3), %v2448_v60 }
   0xc   : > { %v2624_v9 = vadd.s32 (!%p248_p3), 24, %v2613_v4  ;;  %v334_v10 = vsub.s32 (!%p248_p3), 1, %v2613_v4  ;;  %v324_v38 = vadd.s32 (!%p248_p3), 32, %v2613_v4  ;;  %v325_v39 = vadd.s32 (!%p248_p3), 40, %v2613_v4  ;;  %2283 = vmatprep.subr.bf16.mxu0 (!%p248_p3), %v2449_v61 }
   0xd   : > { %v395_v11 = vadd.s32 (!%p248_p3), %v393_v3, %v321_v5  ;;  %v2627_v12 = vrot.slane (!%p248_p3), %v318_v2, %v330_v6  ;;  %v2630_v13 = vadd.s32 (!%p248_p3), %v393_v3, %v2619_v8  ;;  %v331_v34 = vrot.slane (!%p248_p3), %v317_v33, %v330_v6 }
   0xe   : > { %v2634_v14 = vadd.s32 (!%p248_p3), %v393_v3, %v2624_v9  ;;  %v2636_v15 = vrot.slane (!%p248_p3), %v318_v2, %v334_v10  ;;  %v335_v35 = vrot.slane (!%p248_p3), %v317_v33, %v334_v10  ;;  %v326_v45 = vadd.s32 (!%p248_p3), 48, %v2613_v4  ;;  %v2450_v2 = vld [vmem:[%s3077_s2 + $0x10] sm:$0xff] (!%p248_p3)   ;;  %v2451_v3 = vld [vmem:[%s3077_s2 + $0x18] sm:$0xff] (!%p248_p3)  }
   0xf   : > { %s3091_s29 = smov (!%p296_p4, %s2061_s29), 7  ;;  %vm406_vm0 = vcmp.eq.s32.totalorder %v394_v7, %v2627_v12  ;;  %vm408_vm1 = vcmp.eq.s32.totalorder %v395_v11, %v2627_v12  ;;  %vm410_vm2 = vcmp.eq.s32.totalorder %v2630_v13, %v2627_v12  ;;  %vm336_vm10 = vcmp.eq.s32.totalorder %v2613_v4, %v331_v34  ;;  %2284 = vmatpush3.bf16.msra.mxu0 %v2449_v61 }
  0x10   : > { %s2062_s30 = sshll.u32 %s3091_s29, 2  ;;  %v2082_v18 = vsel %vm406_vm0, 1.0, %v2548_v17  ;;  %v2084_v19 = vsel %vm408_vm1, 1.0, %v2548_v17  ;;  %vm2647_vm3 = vmpackc.low %vm408_vm1, %vm406_vm0  ;;  %vm412_vm4 = vcmp.eq.s32.totalorder %v2634_v14, %v2627_v12  ;;  %v2086_v21 = vsel %vm410_vm2, 1.0, %v2548_v17  ;;  %2285 = vmatprep.subr.bf16.mxu0 %v2450_v2  ;;  %v1848_v12 = vld [vmem:[%s3079_s4] sm:$0x3] }
  0x11   : > { %s299_s9 = scalar_lea.vmem %s3078_s3, %s2062_s30  ;;  %v430_v23 = vpack.c.bf16 %v2084_v19, %v2082_v18  ;;  %v2088_v24 = vsel %vm412_vm4, 1.0, %v2548_v17  ;;  %vm407_vm5 = vcmp.eq.s32.totalorder %v394_v7, %v2636_v15  ;;  %vm409_vm6 = vcmp.eq.s32.totalorder %v395_v11, %v2636_v15  ;;  %s2064_s30 = sshll.u32 %s3091_s29, 3 }
  0x12   : > { %v2446_v16 = vld [vmem:[%s299_s9] sm:$0xff]   ;;  %v2447_v22 = vld [vmem:[%s299_s9 + $0x8] sm:$0xff]   ;;  %v2083_v25 = vsel %vm407_vm5, 1.0, %v2548_v17  ;;  %v2085_v26 = vsel %vm409_vm6, 1.0, %v2548_v17  ;;  %vm2665_vm7 = vmpackc.low %vm409_vm6, %vm407_vm5  ;;  %vm411_vm8 = vcmp.eq.s32.totalorder %v2630_v13, %v2636_v15  ;;  %v432_v28 = vpack.c.bf16 %v2088_v24, %v2086_v21  ;;  %s305_s9 = scalar_lea.vmem %s3081_s6, %s2064_s30 }
  0x13   : > { %2321 = vmatprep.subr.bf16.mxu1 %v2446_v16  ;;  %712 = vxpose.xlu0.c.b16.start [1/2] (short) %v430_v23, 128  ;;  %v431_v29 = vpack.c.bf16 %v2085_v26, %v2083_v25  ;;  %vm413_vm9 = vcmp.eq.s32.totalorder %v2634_v14, %v2636_v15  ;;  %v2087_v30 = vsel %vm411_vm8, 1.0, %v2548_v17  ;;  %vm338_vm11 = vcmp.eq.s32.totalorder %v321_v5, %v331_v34 }
  0x14   : > { %2322 = vmatpush3.bf16.msra.mxu1 %v2446_v16  ;;  %v2089_v31 = vsel %vm413_vm9, 1.0, %v2548_v17  ;;  %vm337_vm12 = vcmp.eq.s32.totalorder %v2613_v4, %v335_v35  ;;  %vm339_vm13 = vcmp.eq.s32.totalorder %v321_v5, %v335_v35  ;;  %v2065_v36 = vsel %vm336_vm10, 1.0, %v2548_v17  ;;  %2286 = vmatpush3.bf16.msra.mxu0 %v2450_v2 }
  0x15   : > { %2323 = vmatprep.subr.bf16.mxu1 %v2447_v22  ;;  %728 = vxpose.xlu1.c.b16.start [1/2] (short) %v431_v29, 128  ;;  %v433_v32 = vpack.c.bf16 %v2089_v31, %v2087_v30  ;;  %v2067_v37 = vsel %vm338_vm11, 1.0, %v2548_v17  ;;  %vm340_vm14 = vcmp.eq.s32.totalorder %v2619_v8, %v331_v34  ;;  %vm342_vm15 = vcmp.eq.s32.totalorder %v2624_v9, %v331_v34 }
  0x16   : > { %v2066_v40 = vsel %vm337_vm12, 1.0, %v2548_v17  ;;  %v2068_v41 = vsel %vm339_vm13, 1.0, %v2548_v17  ;;  %v384_v42 = vpack.c.bf16 %v2067_v37, %v2065_v36  ;;  %vm341_vm0 = vcmp.eq.s32.totalorder %v2619_v8, %v335_v35  ;;  %2287 = vmatprep.subr.bf16.mxu0 %v2451_v3 }
  0x17   : > { %713 = vxpose.xlu0.c.b16.end [2/2] (short) %v432_v28, 128  ;;  %vm343_vm1 = vcmp.eq.s32.totalorder %v2624_v9, %v335_v35  ;;  %v2069_v43 = vsel %vm340_vm14, 1.0, %v2548_v17  ;;  %v2071_v44 = vsel %vm342_vm15, 1.0, %v2548_v17  ;;  %vm344_vm5 = vcmp.eq.s32.totalorder %v324_v38, %v331_v34 }
  0x18   : > { %2324 = vmatpush3.bf16.msra.mxu1 %v2447_v22  ;;  %vm346_vm6 = vcmp.eq.s32.totalorder %v325_v39, %v331_v34  ;;  %v327_v46 = vadd.s32 56, %v2613_v4  ;;  %v385_v47 = vpack.c.bf16 %v2068_v41, %v2066_v40  ;;  %v2070_v48 = vsel %vm341_vm0, 1.0, %v2548_v17  ;;  %2288 = vmatpush3.bf16.msra.mxu0 %v2451_v3  ;;  %v2128_v4 = vld [vmem:[#allocation3] ss:$0 sm:$0xff] }
  0x19   : > { %729 = vxpose.xlu1.c.b16.end [2/2] (short) %v433_v32, 128  ;;  %v2072_v49 = vsel %vm343_vm1, 1.0, %v2548_v17  ;;  %v386_v50 = vpack.c.bf16 %v2071_v44, %v2069_v43  ;;  %vm345_vm10 = vcmp.eq.s32.totalorder %v324_v38, %v335_v35  ;;  %vm347_vm11 = vcmp.eq.s32.totalorder %v325_v39, %v335_v35 }
  0x1a   : > { %v2073_v51 = vsel %vm344_vm5, 1.0, %v2548_v17  ;;  %v2075_v52 = vsel %vm346_vm6, 1.0, %v2548_v17  ;;  %vm348_vm12 = vcmp.eq.s32.totalorder %v326_v45, %v331_v34  ;;  %vm350_vm13 = vcmp.eq.s32.totalorder %v327_v46, %v331_v34 }
  0x1b   : > { %v387_v53 = vpack.c.bf16 %v2072_v49, %v2070_v48  ;;  %v2074_v54 = vsel %vm345_vm10, 1.0, %v2548_v17  ;;  %v2076_v55 = vsel %vm347_vm11, 1.0, %v2548_v17  ;;  %v388_v56 = vpack.c.bf16 %v2075_v52, %v2073_v51 }
  0x1c   : > { %vm349_vm14 = vcmp.eq.s32.totalorder %v326_v45, %v335_v35  ;;  %vm351_vm15 = vcmp.eq.s32.totalorder %v327_v46, %v335_v35  ;;  %v2077_v57 = vsel %vm348_vm12, 1.0, %v2548_v17  ;;  %v2079_v58 = vsel %vm350_vm13, 1.0, %v2548_v17 }
  0x1d   : > { %v389_v59 = vpack.c.bf16 %v2076_v55, %v2074_v54  ;;  %v2078_v62 = vsel %vm349_vm14, 1.0, %v2548_v17  ;;  %v2080_v63 = vsel %vm351_vm15, 1.0, %v2548_v17  ;;  %v390_v0 = vpack.c.bf16 %v2079_v58, %v2077_v57 }
  0x1e   : > { %v391_v1 = vpack.c.bf16 %v2080_v63, %v2078_v62  ;;  %v2549_v5 = vmov 0   ;;  %vm756_vm0 = vcmask 261120   ;;  %vm498_vm1 = vcmask 523264  }
  0x1f   : > { %vm1490_vm5 = vcmask 1041408  }
  0x30   : > { %442 = vxpose.xlu0.c.b16.start [1/4] (short) %v384_v42, 128 }
  0x32   : > { %458 = vxpose.xlu1.c.b16.start [1/4] (short) %v385_v47, 128 }
  0x34   : > { %443 = vxpose.xlu0.c.b16.cont [2/4] (short) %v386_v50, 128 }
  0x36   : > { %459 = vxpose.xlu1.c.b16.cont [2/4] (short) %v387_v53, 128 }
  0x38   : > { %444 = vxpose.xlu0.c.b16.cont [3/4] (short) %v388_v56, 128 }
  0x3a   : > { %460 = vxpose.xlu1.c.b16.cont [3/4] (short) %v389_v59, 128 }
  0x3c   : > { %445 = vxpose.xlu0.c.b16.end [4/4] (short) %v390_v0, 128 }
  0x3e   : > { %461 = vxpose.xlu1.c.b16.end [4/4] (short) %v391_v1, 128 }
  0x45   : > { %2445 = vset.pattern.permute.xlu0 %v2549_v5 }
  0x55   : > { %1229 = vperm.xlu0 %2445, %v2128_v4  }
  0x79   : > { %v720_v6 = vpop.trf.xlu0 }
  0x7a   : > { %2325 = vmatprep.mubr.msk.bf16.mxu1 %vm756_vm0, %v720_v6 }
  0x7b   : > { %v736_v7 = vpop.trf.xlu1 }
  0x7d   : > { %v721_v8 = vpop.trf.xlu0 }
  0x7e   : > { %2326 = vmatmul.mubr.msk.bf16.vlgmr.msra.gmra.mrb[0].mxu1 %vm756_vm0, %v721_v8 }
  0x7f   : > { %v737_v10 = vpop.trf.xlu1 }
  0x81   : > { %v722_v9 = vpop.trf.xlu0 }
  0x82   : > { %2329 = vmatprep.mubr.msk.bf16.mxu1 %vm756_vm0, %v722_v9 }
  0x83   : > { %v738_v16 = vpop.trf.xlu1 }
  0x85   : > { %v723_v11 = vpop.trf.xlu0 }
  0x86   : > { %2330 = vmatmul.mubr.msk.bf16.gmra.mrb[4].mxu1 %vm756_vm0, %v723_v11 }
  0x87   : > { %v739_v21 = vpop.trf.xlu1 }
  0x89   : > { %v724_v18 = vpop.trf.xlu0 }
  0x8a   : > { %2333 = vmatprep.mubr.msk.bf16.mxu1 %vm756_vm0, %v724_v18 }
  0x8b   : > { %v740_v23 = vpop.trf.xlu1 }
  0x8d   : > { %v725_v19 = vpop.trf.xlu0 }
  0x8e   : > { %2334 = vmatmul.mubr.msk.bf16.gmra.mrb[8].mxu1 %vm756_vm0, %v725_v19 }
  0x8f   : > { %v741_v25 = vpop.trf.xlu1 }
  0x91   : > { %v726_v22 = vpop.trf.xlu0 }
  0x92   : > { %2337 = vmatprep.mubr.msk.bf16.mxu1 %vm756_vm0, %v726_v22 }
  0x93   : > { %v742_v29 = vpop.trf.xlu1 }
  0x95   : > { %v727_v24 = vpop.trf.xlu0 }
  0x96   : > { %2338 = vmatmul.mubr.msk.bf16.gmra.mrb[12].mxu1 %vm756_vm0, %v727_v24 }
  0x97   : > { %2341 = vmatprep.mubr.msk.bf16.mxu1 %vm756_vm0, %v736_v7  ;;  %v743_v31 = vpop.trf.xlu1 }
  0x99   : > { %v450_v26 = vpop.trf.xlu0 }
  0x9a   : > { %2289 = vmatprep.mubr.msk.bf16.mxu0 %vm498_vm1, %v450_v26 }
  0x9b   : > { %v466_v34 = vpop.trf.xlu1 }
  0x9d   : > { %v451_v28 = vpop.trf.xlu0 }
  0x9e   : > { %2342 = vmatmul.mubr.msk.bf16.gmra.mrb[16].mxu1 %vm756_vm0, %v737_v10  ;;  %2290 = vmatmul.mubr.msk.bf16.vlgmr.msra.gmra.mrb[0].mxu0 %vm498_vm1, %v451_v28 }
  0x9f   : > { %2345 = vmatprep.mubr.msk.bf16.mxu1 %vm756_vm0, %v738_v16  ;;  %v467_v36 = vpop.trf.xlu1 }
  0xa1   : > { %v452_v30 = vpop.trf.xlu0 }
  0xa2   : > { %2293 = vmatprep.mubr.msk.bf16.mxu0 %vm498_vm1, %v452_v30 }
  0xa3   : > { %v468_v39 = vpop.trf.xlu1 }
  0xa5   : > { %v453_v32 = vpop.trf.xlu0 }
  0xa6   : > { %2346 = vmatmul.mubr.msk.bf16.gmra.mrb[20].mxu1 %vm756_vm0, %v739_v21  ;;  %2294 = vmatmul.mubr.msk.bf16.gmra.mrb[4].mxu0 %vm498_vm1, %v453_v32 }
  0xa7   : > { %2349 = vmatprep.mubr.msk.bf16.mxu1 %vm756_vm0, %v740_v23  ;;  %v469_v40 = vpop.trf.xlu1 }
  0xa9   : > { %v454_v33 = vpop.trf.xlu0 }
  0xaa   : > { %2297 = vmatprep.mubr.msk.bf16.mxu0 %vm498_vm1, %v454_v33 }
  0xab   : > { %v470_v41 = vpop.trf.xlu1 }
  0xad   : > { %v455_v35 = vpop.trf.xlu0 }
  0xae   : > { %2350 = vmatmul.mubr.msk.bf16.gmra.mrb[24].mxu1 %vm756_vm0, %v741_v25  ;;  %2298 = vmatmul.mubr.msk.bf16.gmra.mrb[8].mxu0 %vm498_vm1, %v455_v35 }
  0xaf   : > { %2353 = vmatprep.mubr.msk.bf16.mxu1 %vm756_vm0, %v742_v29  ;;  %v471_v42 = vpop.trf.xlu1 }
  0xb1   : > { %v456_v37 = vpop.trf.xlu0 }
  0xb2   : > { %2301 = vmatprep.mubr.msk.bf16.mxu0 %vm498_vm1, %v456_v37 }
  0xb3   : > { %v472_v43 = vpop.trf.xlu1 }
  0xb5   : > { %v457_v38 = vpop.trf.xlu0 }
  0xb6   : > { %2354 = vmatmul.mubr.msk.bf16.gmra.mrb[28].mxu1 %vm756_vm0, %v743_v31  ;;  %2302 = vmatmul.mubr.msk.bf16.gmra.mrb[12].mxu0 %vm498_vm1, %v457_v38 }
  0xb7   : > { %2305 = vmatprep.mubr.msk.bf16.mxu0 %vm498_vm1, %v466_v34  ;;  %v473_v44 = vpop.trf.xlu1 }
  0xbe   : > { %2306 = vmatmul.mubr.msk.bf16.gmra.mrb[16].mxu0 %vm498_vm1, %v467_v36 }
  0xbf   : > { %2309 = vmatprep.mubr.msk.bf16.mxu0 %vm498_vm1, %v468_v39 }
  0xc6   : > { %2310 = vmatmul.mubr.msk.bf16.gmra.mrb[20].mxu0 %vm498_vm1, %v469_v40 }
  0xc7   : > { %2313 = vmatprep.mubr.msk.bf16.mxu0 %vm498_vm1, %v470_v41 }
  0xce   : > { %2314 = vmatmul.mubr.msk.bf16.gmra.mrb[24].mxu0 %vm498_vm1, %v471_v42  ;;  %v1328_v42 = vld [vmem:[%s3079_s4] sm:$0x3] }
  0xcf   : > { %2317 = vmatprep.mubr.msk.bf16.mxu0 %vm498_vm1, %v472_v43  ;;  %2357 = vmatprep.subr.msk.mxu1 %vm1490_vm5, %v1328_v42 }
  0xd0   : > { %2358 = vmatpush3.msk.msra.mxu1 %vm1490_vm5, %v1328_v42 }
  0xd6   : > { %2318 = vmatmul.mubr.msk.bf16.gmra.mrb[28].mxu0 %vm498_vm1, %v473_v44 }
 0x151   : > { %v2327_v45 = vpop.f32.mrb[0].mxu1 }
 0x152   : > { %v839_v46 = vpop.f32.mrb[1].mxu1 }
 0x153   : > { %998 = vrot.lane.b32.xlu1 %v839_v46, %s2550_s20  ;;  %v2328_v47 = vpop.f32.mrb[2].mxu1 }
 0x154   : > { %1004 = vrot.lane.b32.xlu0 %v2328_v47, %s2550_s20  ;;  %v842_v48 = vpop.f32.mrb[3].mxu1 }
 0x157   : > { %1000 = vrot.lane.b32.xlu1 %v842_v48, %s2550_s20 }
 0x159   : > { %v2331_v49 = vpop.f32.mrb[4].mxu1 }
 0x15a   : > { %v855_v50 = vpop.f32.mrb[5].mxu1 }
 0x15b   : > { %1002 = vrot.lane.b32.xlu1 %v2327_v45, %s2550_s20  ;;  %v2332_v51 = vpop.f32.mrb[6].mxu1 }
 0x15c   : > { %v858_v52 = vpop.f32.mrb[7].mxu1 }
 0x15d   : > { %1008 = vrot.lane.b32.xlu0 %v858_v52, %s2550_s20 }
 0x15f   : > { %1006 = vrot.lane.b32.xlu1 %v855_v50, %s2550_s20 }
 0x161   : > { %1012 = vrot.lane.b32.xlu0 %v2332_v51, %s2550_s20  ;;  %v2335_v53 = vpop.f32.mrb[8].mxu1 }
 0x162   : > { %v871_v54 = vpop.f32.mrb[9].mxu1 }
 0x163   : > { %1010 = vrot.lane.b32.xlu1 %v2331_v49, %s2550_s20  ;;  %v2336_v55 = vpop.f32.mrb[10].mxu1 }
 0x164   : > { %v874_v56 = vpop.f32.mrb[11].mxu1 }
 0x165   : > { %1016 = vrot.lane.b32.xlu0 %v874_v56, %s2550_s20 }
 0x167   : > { %1014 = vrot.lane.b32.xlu1 %v871_v54, %s2550_s20 }
 0x169   : > { %1020 = vrot.lane.b32.xlu0 %v2336_v55, %s2550_s20  ;;  %v2339_v57 = vpop.f32.mrb[12].mxu1 }
 0x16a   : > { %v887_v58 = vpop.f32.mrb[13].mxu1 }
 0x16b   : > { %1018 = vrot.lane.b32.xlu1 %v2335_v53, %s2550_s20  ;;  %v2340_v59 = vpop.f32.mrb[14].mxu1  ;;  %v2855_v53 = vpop.permute.xlu0 %1229 }
 0x16c   : > { %v890_v60 = vpop.f32.mrb[15].mxu1 }
 0x16d   : > { %1024 = vrot.lane.b32.xlu0 %v890_v60, %s2550_s20 }
 0x16f   : > { %1022 = vrot.lane.b32.xlu1 %v887_v58, %s2550_s20 }
 0x171   : > { %1028 = vrot.lane.b32.xlu0 %v2340_v59, %s2550_s20  ;;  %v2343_v61 = vpop.f32.mrb[16].mxu1  ;;  %v2769_v62 = vpop.f32.mrb[0].mxu0 }
 0x172   : > { %v903_v63 = vpop.f32.mrb[17].mxu1  ;;  %v2771_v0 = vpop.f32.mrb[1].mxu0 }
 0x173   : > { %1026 = vrot.lane.b32.xlu1 %v2339_v57, %s2550_s20  ;;  %v2344_v1 = vpop.f32.mrb[18].mxu1  ;;  %v2774_v2 = vpop.f32.mrb[2].mxu0 }
 0x174   : > { %v906_v3 = vpop.f32.mrb[19].mxu1  ;;  %v2776_v4 = vpop.f32.mrb[3].mxu0 }
 0x175   : > { %1032 = vrot.lane.b32.xlu0 %v906_v3, %s2550_s20 }
 0x177   : > { %1030 = vrot.lane.b32.xlu1 %v903_v63, %s2550_s20 }
 0x179   : > { %1036 = vrot.lane.b32.xlu0 %v2344_v1, %s2550_s20  ;;  %v2347_v5 = vpop.f32.mrb[20].mxu1  ;;  %v2781_v6 = vpop.f32.mrb[4].mxu0 }
 0x17a   : > { %v919_v7 = vpop.f32.mrb[21].mxu1  ;;  %v2783_v8 = vpop.f32.mrb[5].mxu0 }
 0x17b   : > { %1034 = vrot.lane.b32.xlu1 %v2343_v61, %s2550_s20  ;;  %v2348_v9 = vpop.f32.mrb[22].mxu1  ;;  %v2786_v10 = vpop.f32.mrb[6].mxu0 }
 0x17c   : > { %v922_v11 = vpop.f32.mrb[23].mxu1  ;;  %v2788_v16 = vpop.f32.mrb[7].mxu0 }
 0x17d   : > { %1040 = vrot.lane.b32.xlu0 %v922_v11, %s2550_s20 }
 0x17f   : > { %1038 = vrot.lane.b32.xlu1 %v919_v7, %s2550_s20 }
 0x181   : > { %1044 = vrot.lane.b32.xlu0 %v2348_v9, %s2550_s20  ;;  %v2351_v18 = vpop.f32.mrb[24].mxu1  ;;  %v2793_v19 = vpop.f32.mrb[8].mxu0 }
 0x182   : > { %v935_v21 = vpop.f32.mrb[25].mxu1  ;;  %v2795_v22 = vpop.f32.mrb[9].mxu0 }
 0x183   : > { %1042 = vrot.lane.b32.xlu1 %v2347_v5, %s2550_s20  ;;  %v2352_v23 = vpop.f32.mrb[26].mxu1  ;;  %v2798_v24 = vpop.f32.mrb[10].mxu0 }
 0x184   : > { %v938_v25 = vpop.f32.mrb[27].mxu1  ;;  %v2800_v26 = vpop.f32.mrb[11].mxu0 }
 0x185   : > { %1048 = vrot.lane.b32.xlu0 %v938_v25, %s2550_s20 }
 0x187   : > { %1046 = vrot.lane.b32.xlu1 %v935_v21, %s2550_s20 }
 0x189   : > { %1052 = vrot.lane.b32.xlu0 %v2352_v23, %s2550_s20  ;;  %v2355_v28 = vpop.f32.mrb[28].mxu1  ;;  %v2805_v29 = vpop.f32.mrb[12].mxu0 }
 0x18a   : > { %v951_v30 = vpop.f32.mrb[29].mxu1  ;;  %v2807_v31 = vpop.f32.mrb[13].mxu0 }
 0x18b   : > { %1050 = vrot.lane.b32.xlu1 %v2351_v18, %s2550_s20  ;;  %v2356_v32 = vpop.f32.mrb[30].mxu1  ;;  %v2810_v33 = vpop.f32.mrb[14].mxu0 }
 0x18c   : > { %v954_v34 = vpop.f32.mrb[31].mxu1  ;;  %v2812_v35 = vpop.f32.mrb[15].mxu0 }
 0x18d   : > { %1056 = vrot.lane.b32.xlu0 %v954_v34, %s2550_s20 }
 0x18f   : > { %1054 = vrot.lane.b32.xlu1 %v951_v30, %s2550_s20 }
 0x191   : > { %1060 = vrot.lane.b32.xlu0 %v2356_v32, %s2550_s20  ;;  %v2817_v36 = vpop.f32.mrb[16].mxu0 }
 0x192   : > { %v2819_v37 = vpop.f32.mrb[17].mxu0 }
 0x193   : > { %1058 = vrot.lane.b32.xlu1 %v2355_v28, %s2550_s20  ;;  %v2822_v38 = vpop.f32.mrb[18].mxu0 }
 0x194   : > { %v2824_v39 = vpop.f32.mrb[19].mxu0 }
 0x199   : > { %v2826_v40 = vpop.f32.mrb[20].mxu0 }
 0x19a   : > { %v2828_v41 = vpop.f32.mrb[21].mxu0 }
 0x19b   : > { %v2833_v43 = vpop.f32.mrb[22].mxu0 }
 0x19c   : > { %v2836_v44 = vpop.f32.mrb[23].mxu0 }
 0x1a1   : > { %v2839_v45 = vpop.f32.mrb[24].mxu0 }
 0x1a2   : > { %v2841_v46 = vpop.f32.mrb[25].mxu0 }
 0x1a3   : > { %v2843_v47 = vpop.f32.mrb[26].mxu0 }
 0x1a4   : > { %v2845_v48 = vpop.f32.mrb[27].mxu0 }
 0x1a9   : > { %v2847_v49 = vpop.f32.mrb[28].mxu0 }
 0x1aa   : > { %v2849_v50 = vpop.f32.mrb[29].mxu0 }
 0x1ab   : > { %v2851_v51 = vpop.f32.mrb[30].mxu0 }
 0x1ac   : > { %v2853_v52 = vpop.f32.mrb[31].mxu0 }
 0x1c5   : > { %v999_v54 = vpop.permute.xlu1 %998 }
 0x1c6   : > { %v1094_v55 = vadd.f32 %v999_v54, %v2771_v0  ;;  %v1005_v56 = vpop.permute.xlu0 %1004 }
 0x1c7   : > { %v1097_v57 = vadd.f32 %v2774_v2, %v1005_v56 }
 0x1c8   : > { %vm1126_vm6 = vcmp.gt.f32.partialorder %v1094_v55, 0.0  ;;  %v1158_v58 = vmul.f32 0.2, %v1094_v55 }
 0x1c9   : > { %vm1129_vm10 = vcmp.gt.f32.partialorder %v1097_v57, 0.0  ;;  %v1161_v59 = vmul.f32 0.2, %v1097_v57  ;;  %v1001_v60 = vpop.permute.xlu1 %1000 }
 0x1ca   : > { %v1190_v61 = vsel %vm1126_vm6, %v1094_v55, %v1158_v58  ;;  %v1095_v63 = vadd.f32 %v1001_v60, %v2776_v4 }
 0x1cb   : > { %v1232_v1 = vsub.f32 %v1190_v61, %v2855_v53  ;;  %v1193_v3 = vsel %vm1129_vm10, %v1097_v57, %v1161_v59 }
 0x1cc   : > { %vm1127_vm11 = vcmp.gt.f32.partialorder %v1095_v63, 0.0  ;;  %v1159_v5 = vmul.f32 0.2, %v1095_v63  ;;  %v1235_v9 = vsub.f32 %v1193_v3, %v2855_v53 }
 0x1cd   : > { %v1264_v7 = vmul.f32 1.442695, %v1232_v1  ;;  %v1003_v11 = vpop.permute.xlu1 %1002 }
 0x1ce   : > { %v1191_v18 = vsel %vm1127_vm11, %v1095_v63, %v1159_v5  ;;  %v1096_v21 = vadd.f32 %v2769_v62, %v1003_v11  ;;  %v1270_v32 = vmul.f32 1.442695, %v1235_v9 }
 0x1cf   : > { %2452 = vpow2.f32 %v1264_v7  ;;  %v1233_v23 = vsub.f32 %v1191_v18, %v2855_v53  ;;  %v1009_v25 = vpop.permute.xlu0 %1008 }
 0x1d0   : > { %vm1128_vm12 = vcmp.gt.f32.partialorder %v1096_v21, 0.0  ;;  %v1160_v28 = vmul.f32 0.2, %v1096_v21  ;;  %v1099_v30 = vadd.f32 %v1009_v25, %v2788_v16 }
 0x1d1   : > { %v1266_v34 = vmul.f32 1.442695, %v1233_v23  ;;  %v1007_v42 = vpop.permute.xlu1 %1006 }
 0x1d2   : > { %v1192_v54 = vsel %vm1128_vm12, %v1096_v21, %v1160_v28  ;;  %vm1131_vm13 = vcmp.gt.f32.partialorder %v1099_v30, 0.0  ;;  %v1163_v55 = vmul.f32 0.2, %v1099_v30  ;;  %v1098_v56 = vadd.f32 %v1007_v42, %v2783_v8 }
 0x1d3   : > { %2454 = vpow2.f32 %v1266_v34  ;;  %v1234_v57 = vsub.f32 %v1192_v54, %v2855_v53  ;;  %v1013_v58 = vpop.permute.xlu0 %1012 }
 0x1d4   : > { %v1195_v59 = vsel %vm1131_vm13, %v1099_v30, %v1163_v55  ;;  %vm1130_vm14 = vcmp.gt.f32.partialorder %v1098_v56, 0.0  ;;  %v1162_v60 = vmul.f32 0.2, %v1098_v56  ;;  %v1101_v61 = vadd.f32 %v2786_v10, %v1013_v58 }
 0x1d5   : > { %2456 = vpow2.f32 %v1270_v32  ;;  %v1268_v63 = vmul.f32 1.442695, %v1234_v57  ;;  %v1237_v1 = vsub.f32 %v1195_v59, %v2855_v53  ;;  %v1011_v3 = vpop.permute.xlu1 %1010 }
 0x1d6   : > { %v1194_v5 = vsel %vm1130_vm14, %v1098_v56, %v1162_v60  ;;  %vm1133_vm15 = vcmp.gt.f32.partialorder %v1101_v61, 0.0  ;;  %v1165_v7 = vmul.f32 0.2, %v1101_v61  ;;  %v1100_v9 = vadd.f32 %v2781_v6, %v1011_v3 }
 0x1d7   : > { %2458 = vpow2.f32 %v1268_v63  ;;  %v1274_v11 = vmul.f32 1.442695, %v1237_v1  ;;  %v1236_v18 = vsub.f32 %v1194_v5, %v2855_v53  ;;  %v1017_v21 = vpop.permute.xlu0 %1016 }
 0x1d8   : > { %v1197_v23 = vsel %vm1133_vm15, %v1101_v61, %v1165_v7  ;;  %vm1132_vm1 = vcmp.gt.f32.partialorder %v1100_v9, 0.0  ;;  %v1164_v25 = vmul.f32 0.2, %v1100_v9  ;;  %v1103_v28 = vadd.f32 %v1017_v21, %v2800_v26 }
 0x1d9   : > { %v2453_v30 = vpop.eup %2452  ;;  %2460 = vpow2.f32 %v1274_v11  ;;  %v1272_v32 = vmul.f32 1.442695, %v1236_v18  ;;  %v1239_v34 = vsub.f32 %v1197_v23, %v2855_v53  ;;  %v1015_v42 = vpop.permute.xlu1 %1014 }
 0x1da   : > { %v1196_v54 = vsel %vm1132_vm1, %v1100_v9, %v1164_v25  ;;  %vm1135_vm6 = vcmp.gt.f32.partialorder %v1103_v28, 0.0  ;;  %v1167_v55 = vmul.f32 0.2, %v1103_v28  ;;  %v1102_v56 = vadd.f32 %v1015_v42, %v2795_v22  ;;  %1361 = vrot.lane.b32.xlu1 %v2453_v30, %s2551_s23 }
 0x1db   : > { %2462 = vpow2.f32 %v1272_v32  ;;  %v1278_v57 = vmul.f32 1.442695, %v1239_v34  ;;  %v1238_v58 = vsub.f32 %v1196_v54, %v2855_v53  ;;  %v1021_v59 = vpop.permute.xlu0 %1020 }
 0x1dc   : > { %v1199_v60 = vsel %vm1135_vm6, %v1103_v28, %v1167_v55  ;;  %vm1134_vm10 = vcmp.gt.f32.partialorder %v1102_v56, 0.0  ;;  %v1166_v61 = vmul.f32 0.2, %v1102_v56  ;;  %v1105_v63 = vadd.f32 %v2798_v24, %v1021_v59 }
 0x1dd   : > { %v2455_v1 = vpop.eup %2454  ;;  %2464 = vpow2.f32 %v1278_v57  ;;  %v1276_v3 = vmul.f32 1.442695, %v1238_v58  ;;  %v1241_v5 = vsub.f32 %v1199_v60, %v2855_v53  ;;  %v1019_v7 = vpop.permute.xlu1 %1018 }
 0x1de   : > { %v1198_v9 = vsel %vm1134_vm10, %v1102_v56, %v1166_v61  ;;  %vm1137_vm11 = vcmp.gt.f32.partialorder %v1105_v63, 0.0  ;;  %v1169_v11 = vmul.f32 0.2, %v1105_v63  ;;  %v1104_v18 = vadd.f32 %v2793_v19, %v1019_v7  ;;  %1363 = vrot.lane.b32.xlu0 %v2455_v1, %s2551_s23 }
 0x1df   : > { %v2457_v21 = vpop.eup %2456  ;;  %2466 = vpow2.f32 %v1276_v3  ;;  %v1282_v23 = vmul.f32 1.442695, %v1241_v5  ;;  %v1240_v25 = vsub.f32 %v1198_v9, %v2855_v53  ;;  %v1025_v28 = vpop.permute.xlu0 %1024 }
 0x1e0   : > { %v1201_v30 = vsel %vm1137_vm11, %v1105_v63, %v1169_v11  ;;  %vm1136_vm12 = vcmp.gt.f32.partialorder %v1104_v18, 0.0  ;;  %v1168_v32 = vmul.f32 0.2, %v1104_v18  ;;  %v1107_v34 = vadd.f32 %v1025_v28, %v2812_v35 }
 0x1e1   : > { %v2459_v42 = vpop.eup %2458  ;;  %2468 = vpow2.f32 %v1282_v23  ;;  %v1280_v54 = vmul.f32 1.442695, %v1240_v25  ;;  %v1243_v55 = vsub.f32 %v1201_v30, %v2855_v53  ;;  %v1023_v56 = vpop.permute.xlu1 %1022 }
 0x1e2   : > { %v1200_v57 = vsel %vm1136_vm12, %v1104_v18, %v1168_v32  ;;  %vm1139_vm13 = vcmp.gt.f32.partialorder %v1107_v34, 0.0  ;;  %v1171_v58 = vmul.f32 0.2, %v1107_v34  ;;  %v1106_v59 = vadd.f32 %v1023_v56, %v2807_v31  ;;  %1365 = vrot.lane.b32.xlu1 %v2459_v42, %s2551_s23  ;;  %1367 = vrot.lane.b32.xlu0 %v2457_v21, %s2551_s23 }
 0x1e3   : > { %v2461_v60 = vpop.eup %2460  ;;  %2470 = vpow2.f32 %v1280_v54  ;;  %v1286_v61 = vmul.f32 1.442695, %v1243_v55  ;;  %v1242_v63 = vsub.f32 %v1200_v57, %v2855_v53  ;;  %v1029_v1 = vpop.permute.xlu0 %1028 }
 0x1e4   : > { %v1203_v3 = vsel %vm1139_vm13, %v1107_v34, %v1171_v58  ;;  %vm1138_vm14 = vcmp.gt.f32.partialorder %v1106_v59, 0.0  ;;  %v1170_v5 = vmul.f32 0.2, %v1106_v59  ;;  %v1109_v7 = vadd.f32 %v2810_v33, %v1029_v1 }
 0x1e5   : > { %v2463_v9 = vpop.eup %2462  ;;  %2472 = vpow2.f32 %v1286_v61  ;;  %v1284_v11 = vmul.f32 1.442695, %v1242_v63  ;;  %v1245_v18 = vsub.f32 %v1203_v3, %v2855_v53  ;;  %v1027_v23 = vpop.permute.xlu1 %1026 }
 0x1e6   : > { %v1202_v25 = vsel %vm1138_vm14, %v1106_v59, %v1170_v5  ;;  %vm1141_vm15 = vcmp.gt.f32.partialorder %v1109_v7, 0.0  ;;  %v1173_v21 = vmul.f32 0.2, %v1109_v7  ;;  %v1108_v28 = vadd.f32 %v2805_v29, %v1027_v23  ;;  %1369 = vrot.lane.b32.xlu1 %v2463_v9, %s2551_s23  ;;  %1371 = vrot.lane.b32.xlu0 %v2461_v60, %s2551_s23 }
 0x1e7   : > { %v2465_v30 = vpop.eup %2464  ;;  %2474 = vpow2.f32 %v1284_v11  ;;  %v1290_v32 = vmul.f32 1.442695, %v1245_v18  ;;  %v1244_v34 = vsub.f32 %v1202_v25, %v2855_v53  ;;  %v1033_v42 = vpop.permute.xlu0 %1032 }
 0x1e8   : > { %v1205_v54 = vsel %vm1141_vm15, %v1109_v7, %v1173_v21  ;;  %vm1140_vm1 = vcmp.gt.f32.partialorder %v1108_v28, 0.0  ;;  %v1172_v55 = vmul.f32 0.2, %v1108_v28  ;;  %v1111_v56 = vadd.f32 %v1033_v42, %v2824_v39 }
 0x1e9   : > { %v2467_v57 = vpop.eup %2466  ;;  %2476 = vpow2.f32 %v1290_v32  ;;  %v1288_v58 = vmul.f32 1.442695, %v1244_v34  ;;  %v1247_v59 = vsub.f32 %v1205_v54, %v2855_v53  ;;  %v1031_v61 = vpop.permute.xlu1 %1030 }
 0x1ea   : > { %v1204_v63 = vsel %vm1140_vm1, %v1108_v28, %v1172_v55  ;;  %vm1143_vm6 = vcmp.gt.f32.partialorder %v1111_v56, 0.0  ;;  %v1175_v60 = vmul.f32 0.2, %v1111_v56  ;;  %v1110_v1 = vadd.f32 %v1031_v61, %v2819_v37  ;;  %1373 = vrot.lane.b32.xlu1 %v2467_v57, %s2551_s23  ;;  %1375 = vrot.lane.b32.xlu0 %v2465_v30, %s2551_s23 }
 0x1eb   : > { %v2469_v3 = vpop.eup %2468  ;;  %2478 = vpow2.f32 %v1288_v58  ;;  %v1294_v5 = vmul.f32 1.442695, %v1247_v59  ;;  %v1246_v7 = vsub.f32 %v1204_v63, %v2855_v53  ;;  %v1037_v9 = vpop.permute.xlu0 %1036 }
 0x1ec   : > { %v1207_v11 = vsel %vm1143_vm6, %v1111_v56, %v1175_v60  ;;  %vm1142_vm10 = vcmp.gt.f32.partialorder %v1110_v1, 0.0  ;;  %v1174_v18 = vmul.f32 0.2, %v1110_v1  ;;  %v1113_v23 = vadd.f32 %v2822_v38, %v1037_v9 }
 0x1ed   : > { %v2471_v25 = vpop.eup %2470  ;;  %2480 = vpow2.f32 %v1294_v5  ;;  %v1292_v21 = vmul.f32 1.442695, %v1246_v7  ;;  %v1249_v28 = vsub.f32 %v1207_v11, %v2855_v53  ;;  %v1035_v32 = vpop.permute.xlu1 %1034 }
 0x1ee   : > { %v1206_v34 = vsel %vm1142_vm10, %v1110_v1, %v1174_v18  ;;  %vm1145_vm11 = vcmp.gt.f32.partialorder %v1113_v23, 0.0  ;;  %v1177_v30 = vmul.f32 0.2, %v1113_v23  ;;  %v1112_v42 = vadd.f32 %v2817_v36, %v1035_v32  ;;  %1377 = vrot.lane.b32.xlu1 %v2471_v25, %s2551_s23  ;;  %1379 = vrot.lane.b32.xlu0 %v2469_v3, %s2551_s23 }
 0x1ef   : > { %v2473_v54 = vpop.eup %2472  ;;  %2482 = vpow2.f32 %v1292_v21  ;;  %v1298_v55 = vmul.f32 1.442695, %v1249_v28  ;;  %v1248_v56 = vsub.f32 %v1206_v34, %v2855_v53  ;;  %v1041_v57 = vpop.permute.xlu0 %1040 }
 0x1f0   : > { %v1209_v58 = vsel %vm1145_vm11, %v1113_v23, %v1177_v30  ;;  %vm1144_vm12 = vcmp.gt.f32.partialorder %v1112_v42, 0.0  ;;  %v1176_v59 = vmul.f32 0.2, %v1112_v42  ;;  %v1115_v61 = vadd.f32 %v1041_v57, %v2836_v44 }
 0x1f1   : > { %v2475_v63 = vpop.eup %2474  ;;  %2484 = vpow2.f32 %v1298_v55  ;;  %v1296_v60 = vmul.f32 1.442695, %v1248_v56  ;;  %v1251_v1 = vsub.f32 %v1209_v58, %v2855_v53  ;;  %v1039_v5 = vpop.permute.xlu1 %1038 }
 0x1f2   : > { %v1208_v7 = vsel %vm1144_vm12, %v1112_v42, %v1176_v59  ;;  %vm1147_vm13 = vcmp.gt.f32.partialorder %v1115_v61, 0.0  ;;  %v1179_v3 = vmul.f32 0.2, %v1115_v61  ;;  %v1114_v9 = vadd.f32 %v1039_v5, %v2828_v41  ;;  %1381 = vrot.lane.b32.xlu1 %v2475_v63, %s2551_s23  ;;  %1383 = vrot.lane.b32.xlu0 %v2473_v54, %s2551_s23 }
 0x1f3   : > { %v2477_v11 = vpop.eup %2476  ;;  %2486 = vpow2.f32 %v1296_v60  ;;  %v1302_v18 = vmul.f32 1.442695, %v1251_v1  ;;  %v1250_v23 = vsub.f32 %v1208_v7, %v2855_v53  ;;  %v1045_v25 = vpop.permute.xlu0 %1044 }
 0x1f4   : > { %v1211_v21 = vsel %vm1147_vm13, %v1115_v61, %v1179_v3  ;;  %vm1146_vm14 = vcmp.gt.f32.partialorder %v1114_v9, 0.0  ;;  %v1178_v28 = vmul.f32 0.2, %v1114_v9  ;;  %v1117_v32 = vadd.f32 %v2833_v43, %v1045_v25 }
 0x1f5   : > { %v2479_v34 = vpop.eup %2478  ;;  %2488 = vpow2.f32 %v1302_v18  ;;  %v1300_v30 = vmul.f32 1.442695, %v1250_v23  ;;  %v1253_v42 = vsub.f32 %v1211_v21, %v2855_v53  ;;  %v1043_v55 = vpop.permute.xlu1 %1042 }
 0x1f6   : > { %v1210_v56 = vsel %vm1146_vm14, %v1114_v9, %v1178_v28  ;;  %vm1149_vm15 = vcmp.gt.f32.partialorder %v1117_v32, 0.0  ;;  %v1181_v54 = vmul.f32 0.2, %v1117_v32  ;;  %v1116_v57 = vadd.f32 %v2826_v40, %v1043_v55  ;;  %1385 = vrot.lane.b32.xlu1 %v2479_v34, %s2551_s23  ;;  %1387 = vrot.lane.b32.xlu0 %v2477_v11, %s2551_s23 }
 0x1f7   : > { %v2481_v58 = vpop.eup %2480  ;;  %2490 = vpow2.f32 %v1300_v30  ;;  %v1306_v59 = vmul.f32 1.442695, %v1253_v42  ;;  %v1252_v61 = vsub.f32 %v1210_v56, %v2855_v53  ;;  %v1049_v63 = vpop.permute.xlu0 %1048 }
 0x1f8   : > { %v1213_v60 = vsel %vm1149_vm15, %v1117_v32, %v1181_v54  ;;  %vm1148_vm1 = vcmp.gt.f32.partialorder %v1116_v57, 0.0  ;;  %v1180_v1 = vmul.f32 0.2, %v1116_v57  ;;  %v1119_v5 = vadd.f32 %v1049_v63, %v2845_v48 }
 0x1f9   : > { %v2483_v7 = vpop.eup %2482  ;;  %2492 = vpow2.f32 %v1306_v59  ;;  %v1304_v3 = vmul.f32 1.442695, %v1252_v61  ;;  %v1255_v9 = vsub.f32 %v1213_v60, %v2855_v53  ;;  %v1047_v18 = vpop.permute.xlu1 %1046 }
 0x1fa   : > { %v1212_v23 = vsel %vm1148_vm1, %v1116_v57, %v1180_v1  ;;  %vm1151_vm6 = vcmp.gt.f32.partialorder %v1119_v5, 0.0  ;;  %v1183_v11 = vmul.f32 0.2, %v1119_v5  ;;  %v1118_v25 = vadd.f32 %v1047_v18, %v2841_v46  ;;  %1389 = vrot.lane.b32.xlu1 %v2483_v7, %s2551_s23  ;;  %1391 = vrot.lane.b32.xlu0 %v2481_v58, %s2551_s23 }
 0x1fb   : > { %v2485_v21 = vpop.eup %2484  ;;  %2494 = vpow2.f32 %v1304_v3  ;;  %v1310_v28 = vmul.f32 1.442695, %v1255_v9  ;;  %v1254_v32 = vsub.f32 %v1212_v23, %v2855_v53  ;;  %v1053_v34 = vpop.permute.xlu0 %1052 }
 0x1fc   : > { %v1215_v30 = vsel %vm1151_vm6, %v1119_v5, %v1183_v11  ;;  %vm1150_vm10 = vcmp.gt.f32.partialorder %v1118_v25, 0.0  ;;  %v1182_v42 = vmul.f32 0.2, %v1118_v25  ;;  %v1121_v55 = vadd.f32 %v2843_v47, %v1053_v34 }
 0x1fd   : > { %v2487_v56 = vpop.eup %2486  ;;  %2496 = vpow2.f32 %v1310_v28  ;;  %v1308_v54 = vmul.f32 1.442695, %v1254_v32  ;;  %v1257_v57 = vsub.f32 %v1215_v30, %v2855_v53  ;;  %v1051_v59 = vpop.permute.xlu1 %1050  ;;  %vm1425_vm6 = vcmask 15360  }
 0x1fe   : > { %v1214_v61 = vsel %vm1150_vm10, %v1118_v25, %v1182_v42  ;;  %vm1153_vm11 = vcmp.gt.f32.partialorder %v1121_v55, 0.0  ;;  %v1185_v58 = vmul.f32 0.2, %v1121_v55  ;;  %v1120_v63 = vadd.f32 %v2839_v45, %v1051_v59  ;;  %1393 = vrot.lane.b32.xlu1 %v2487_v56, %s2551_s23  ;;  %1395 = vrot.lane.b32.xlu0 %v2485_v21, %s2551_s23  ;;  %vm2168_vm10 = vmpackc.low %vm412_vm4, %vm410_vm2 }
 0x1ff   : > { %v2489_v60 = vpop.eup %2488  ;;  %2498 = vpow2.f32 %v1308_v54  ;;  %v1314_v1 = vmul.f32 1.442695, %v1257_v57  ;;  %v1256_v5 = vsub.f32 %v1214_v61, %v2855_v53  ;;  %v1057_v7 = vpop.permute.xlu0 %1056 }
 0x200   : > { %v1217_v3 = vsel %vm1153_vm11, %v1121_v55, %v1185_v58  ;;  %vm1152_vm12 = vcmp.gt.f32.partialorder %v1120_v63, 0.0  ;;  %v1184_v9 = vmul.f32 0.2, %v1120_v63  ;;  %v1123_v18 = vadd.f32 %v1057_v7, %v2853_v52 }
 0x201   : > { %v2491_v23 = vpop.eup %2490  ;;  %2500 = vpow2.f32 %v1314_v1  ;;  %v1312_v11 = vmul.f32 1.442695, %v1256_v5  ;;  %v1259_v25 = vsub.f32 %v1217_v3, %v2855_v53  ;;  %v1055_v28 = vpop.permute.xlu1 %1054  ;;  %vm312_vm11 = vcmask 293888  }
 0x202   : > { %v1216_v32 = vsel %vm1152_vm12, %v1120_v63, %v1184_v9  ;;  %vm1155_vm13 = vcmp.gt.f32.partialorder %v1123_v18, 0.0  ;;  %v1187_v21 = vmul.f32 0.2, %v1123_v18  ;;  %v1122_v34 = vadd.f32 %v1055_v28, %v2849_v50  ;;  %1397 = vrot.lane.b32.xlu1 %v2491_v23, %s2551_s23  ;;  %1399 = vrot.lane.b32.xlu0 %v2489_v60, %s2551_s23  ;;  %313 = vst.msk [vmem:[#allocation2] sm:$0xff] %vm312_vm11, %v2548_v17 }
 0x203   : > { %v2493_v30 = vpop.eup %2492  ;;  %2502 = vpow2.f32 %v1312_v11  ;;  %v1318_v42 = vmul.f32 1.442695, %v1259_v25  ;;  %v1258_v55 = vsub.f32 %v1216_v32, %v2855_v53  ;;  %v1061_v56 = vpop.permute.xlu0 %1060  ;;  %314 = vst.msk [vmem:[#allocation2 + $0x8] sm:$0xff] %vm312_vm11, %v2548_v17  ;;  %315 = vst.msk [vmem:[#allocation2 + $0x10] sm:$0xff] %vm312_vm11, %v2548_v17 }
 0x204   : > { %v1219_v54 = vsel %vm1155_vm13, %v1123_v18, %v1187_v21  ;;  %vm1154_vm14 = vcmp.gt.f32.partialorder %v1122_v34, 0.0  ;;  %v1186_v57 = vmul.f32 0.2, %v1122_v34  ;;  %v1125_v59 = vadd.f32 %v2851_v51, %v1061_v56  ;;  %316 = vst.msk [vmem:[#allocation2 + $0x18] sm:$0xff] %vm312_vm11, %v2548_v17 }
 0x205   : > { %v2495_v61 = vpop.eup %2494  ;;  %2504 = vpow2.f32 %v1318_v42  ;;  %v1316_v58 = vmul.f32 1.442695, %v1258_v55  ;;  %v1261_v63 = vsub.f32 %v1219_v54, %v2855_v53  ;;  %v1059_v1 = vpop.permute.xlu1 %1058 }
 0x206   : > { %v1218_v5 = vsel %vm1154_vm14, %v1122_v34, %v1186_v57  ;;  %vm1157_vm15 = vcmp.gt.f32.partialorder %v1125_v59, 0.0  ;;  %v1189_v60 = vmul.f32 0.2, %v1125_v59  ;;  %v1124_v7 = vadd.f32 %v2847_v49, %v1059_v1  ;;  %1401 = vrot.lane.b32.xlu1 %v2495_v61, %s2551_s23  ;;  %1403 = vrot.lane.b32.xlu0 %v2493_v30, %s2551_s23 }
 0x207   : > { %v2497_v3 = vpop.eup %2496  ;;  %2506 = vpow2.f32 %v1316_v58  ;;  %v1322_v9 = vmul.f32 1.442695, %v1261_v63  ;;  %v1260_v18 = vsub.f32 %v1218_v5, %v2855_v53 }
 0x208   : > { %v1221_v23 = vsel %vm1157_vm15, %v1125_v59, %v1189_v60  ;;  %vm1156_vm1 = vcmp.gt.f32.partialorder %v1124_v7, 0.0  ;;  %v1188_v11 = vmul.f32 0.2, %v1124_v7 }
 0x209   : > { %v2499_v25 = vpop.eup %2498  ;;  %v1320_v28 = vmul.f32 1.442695, %v1260_v18  ;;  %v1263_v32 = vsub.f32 %v1221_v23, %v2855_v53  ;;  %2508 = vpow2.f32 %v1322_v9  ;;  %v1767_v14 = vld [vmem:[#allocation2] sm:$0xff] }
 0x20a   : > { %v1220_v21 = vsel %vm1156_vm1, %v1124_v7, %v1188_v11  ;;  %1405 = vrot.lane.b32.xlu1 %v2499_v25, %s2551_s23  ;;  %1407 = vrot.lane.b32.xlu0 %v2497_v3, %s2551_s23 }
 0x20b   : > { %v2501_v34 = vpop.eup %2500  ;;  %2510 = vpow2.f32 %v1320_v28  ;;  %v1326_v30 = vmul.f32 1.442695, %v1263_v32  ;;  %v1262_v42 = vsub.f32 %v1220_v21, %v2855_v53 }
 0x20d   : > { %v2503_v55 = vpop.eup %2502  ;;  %v1324_v56 = vmul.f32 1.442695, %v1262_v42  ;;  %2512 = vpow2.f32 %v1326_v30 }
 0x20e   : > { %1409 = vrot.lane.b32.xlu1 %v2503_v55, %s2551_s23  ;;  %1411 = vrot.lane.b32.xlu0 %v2501_v34, %s2551_s23 }
 0x20f   : > { %v2505_v54 = vpop.eup %2504  ;;  %2514 = vpow2.f32 %v1324_v56 }
 0x211   : > { %v2507_v57 = vpop.eup %2506 }
 0x212   : > { %1413 = vrot.lane.b32.xlu1 %v2507_v57, %s2551_s23  ;;  %1415 = vrot.lane.b32.xlu0 %v2505_v54, %s2551_s23 }
 0x213   : > { %v2509_v59 = vpop.eup %2508 }
 0x215   : > { %v2511_v61 = vpop.eup %2510 }
 0x216   : > { %1417 = vrot.lane.b32.xlu1 %v2511_v61, %s2551_s23  ;;  %1419 = vrot.lane.b32.xlu0 %v2509_v59, %s2551_s23 }
 0x217   : > { %v2513_v53 = vpop.eup %2512 }
 0x219   : > { %v2515_v58 = vpop.eup %2514 }
 0x21a   : > { %1421 = vrot.lane.b32.xlu1 %v2515_v58, %s2551_s23  ;;  %1423 = vrot.lane.b32.xlu0 %v2513_v53, %s2551_s23 }
 0x24c   : > { %v1362_v63 = vpop.permute.xlu1 %1361 }
 0x24d   : > { %2359 = vmatprep.mubr.msk.f32.mxu1 %vm1425_vm6, %v1362_v63 }
 0x250   : > { %v1364_v1 = vpop.permute.xlu0 %1363 }
 0x251   : > { %2360 = vmatmul.mubr.msk.f32.vlgmr.msra.gmra.mrb[32].mxu1 %vm1425_vm6, %v1364_v1 }
 0x254   : > { %v1366_v5 = vpop.permute.xlu1 %1365  ;;  %v1368_v60 = vpop.permute.xlu0 %1367 }
 0x255   : > { %2362 = vmatprep.mubr.msk.f32.mxu1 %vm1425_vm6, %v1366_v5 }
 0x256   : > { %2363 = vmatmul.mubr.msk.f32.gmra.mrb[34].mxu1 %vm1425_vm6, %v1368_v60 }
 0x258   : > { %v1370_v7 = vpop.permute.xlu1 %1369  ;;  %v1372_v3 = vpop.permute.xlu0 %1371 }
 0x259   : > { %2365 = vmatprep.mubr.msk.f32.mxu1 %vm1425_vm6, %v1370_v7 }
 0x25a   : > { %2366 = vmatmul.mubr.msk.f32.gmra.mrb[36].mxu1 %vm1425_vm6, %v1372_v3 }
 0x25c   : > { %v1374_v9 = vpop.permute.xlu1 %1373  ;;  %v1376_v18 = vpop.permute.xlu0 %1375 }
 0x25d   : > { %2368 = vmatprep.mubr.msk.f32.mxu1 %vm1425_vm6, %v1374_v9 }
 0x25e   : > { %2369 = vmatmul.mubr.msk.f32.gmra.mrb[38].mxu1 %vm1425_vm6, %v1376_v18  ;;  %v2552_v18 = vmov 1.0|1.0  }
 0x25f   : > { %2163 = vmatprep.mubr.msk.bf16.mxu0 %vm2665_vm7, %v2552_v18  ;;  %vm2166_vm7 = vmpackc.low %vm413_vm9, %vm411_vm8 }
 0x260   : > { %v1378_v23 = vpop.permute.xlu1 %1377  ;;  %v1380_v11 = vpop.permute.xlu0 %1379 }
 0x261   : > { %2371 = vmatprep.mubr.msk.f32.mxu1 %vm1425_vm6, %v1378_v23 }
 0x262   : > { %2372 = vmatmul.mubr.msk.f32.gmra.mrb[40].mxu1 %vm1425_vm6, %v1380_v11 }
 0x264   : > { %v1382_v25 = vpop.permute.xlu1 %1381  ;;  %v1384_v28 = vpop.permute.xlu0 %1383 }
 0x265   : > { %2374 = vmatprep.mubr.msk.f32.mxu1 %vm1425_vm6, %v1382_v25 }
 0x266   : > { %2375 = vmatmul.mubr.msk.f32.gmra.mrb[42].mxu1 %vm1425_vm6, %v1384_v28 }
 0x268   : > { %v1386_v32 = vpop.permute.xlu1 %1385  ;;  %v1388_v21 = vpop.permute.xlu0 %1387 }
 0x269   : > { %2377 = vmatprep.mubr.msk.f32.mxu1 %vm1425_vm6, %v1386_v32 }
 0x26a   : > { %2378 = vmatmul.mubr.msk.f32.gmra.mrb[44].mxu1 %vm1425_vm6, %v1388_v21 }
 0x26c   : > { %v1390_v34 = vpop.permute.xlu1 %1389  ;;  %v1392_v30 = vpop.permute.xlu0 %1391 }
 0x26d   : > { %2380 = vmatprep.mubr.msk.f32.mxu1 %vm1425_vm6, %v1390_v34 }
 0x26e   : > { %2381 = vmatmul.mubr.msk.f32.gmra.mrb[46].mxu1 %vm1425_vm6, %v1392_v30 }
 0x270   : > { %v1394_v42 = vpop.permute.xlu1 %1393  ;;  %v1396_v55 = vpop.permute.xlu0 %1395 }
 0x271   : > { %2383 = vmatprep.mubr.msk.f32.mxu1 %vm1425_vm6, %v1394_v42 }
 0x272   : > { %2384 = vmatmul.mubr.msk.f32.gmra.mrb[48].mxu1 %vm1425_vm6, %v1396_v55 }
 0x274   : > { %v1398_v56 = vpop.permute.xlu1 %1397  ;;  %v1400_v54 = vpop.permute.xlu0 %1399 }
 0x275   : > { %2386 = vmatprep.mubr.msk.f32.mxu1 %vm1425_vm6, %v1398_v56 }
 0x276   : > { %2387 = vmatmul.mubr.msk.f32.gmra.mrb[50].mxu1 %vm1425_vm6, %v1400_v54 }
 0x278   : > { %v1402_v57 = vpop.permute.xlu1 %1401  ;;  %v1404_v59 = vpop.permute.xlu0 %1403 }
 0x279   : > { %2389 = vmatprep.mubr.msk.f32.mxu1 %vm1425_vm6, %v1402_v57 }
 0x27a   : > { %2390 = vmatmul.mubr.msk.f32.gmra.mrb[52].mxu1 %vm1425_vm6, %v1404_v59 }
 0x27c   : > { %v1406_v61 = vpop.permute.xlu1 %1405  ;;  %v1408_v53 = vpop.permute.xlu0 %1407 }
 0x27d   : > { %2392 = vmatprep.mubr.msk.f32.mxu1 %vm1425_vm6, %v1406_v61 }
 0x27e   : > { %2393 = vmatmul.mubr.msk.f32.gmra.mrb[54].mxu1 %vm1425_vm6, %v1408_v53 }
 0x280   : > { %v1410_v58 = vpop.permute.xlu1 %1409  ;;  %v1412_v63 = vpop.permute.xlu0 %1411 }
 0x281   : > { %2395 = vmatprep.mubr.msk.f32.mxu1 %vm1425_vm6, %v1410_v58 }
 0x282   : > { %2396 = vmatmul.mubr.msk.f32.gmra.mrb[56].mxu1 %vm1425_vm6, %v1412_v63 }
 0x284   : > { %v1414_v1 = vpop.permute.xlu1 %1413  ;;  %v1416_v5 = vpop.permute.xlu0 %1415 }
 0x285   : > { %2398 = vmatprep.mubr.msk.f32.mxu1 %vm1425_vm6, %v1414_v1 }
 0x286   : > { %2399 = vmatmul.mubr.msk.f32.gmra.mrb[58].mxu1 %vm1425_vm6, %v1416_v5 }
 0x288   : > { %v1418_v60 = vpop.permute.xlu1 %1417  ;;  %v1420_v7 = vpop.permute.xlu0 %1419 }
 0x289   : > { %2401 = vmatprep.mubr.msk.f32.mxu1 %vm1425_vm6, %v1418_v60 }
 0x28a   : > { %2402 = vmatmul.mubr.msk.f32.gmra.mrb[60].mxu1 %vm1425_vm6, %v1420_v7 }
 0x28c   : > { %v1422_v3 = vpop.permute.xlu1 %1421  ;;  %v1424_v9 = vpop.permute.xlu0 %1423 }
 0x28d   : > { %2404 = vmatprep.mubr.msk.f32.mxu1 %vm1425_vm6, %v1422_v3 }
 0x28e   : > { %2405 = vmatmul.mubr.msk.f32.gmra.mrb[62].mxu1 %vm1425_vm6, %v1424_v9 }
 0x324   : > { %v2361_v23 = vpop.f32.mrb[32].mxu1 }
 0x325   : > { %v1720_v11 = vmul.f32 %v2361_v23, %v2776_v4  ;;  %v1560_v25 = vpop.f32.mrb[33].mxu1 }
 0x326   : > { %v1719_v28 = vmul.f32 %v1560_v25, %v2771_v0 }
 0x328   : > { %v1751_v32 = vpack.c.bf16 %v1720_v11, %v1719_v28 }
 0x329   : > { %v2364_v21 = vpop.f32.mrb[34].mxu1 }
 0x32a   : > { %v1722_v34 = vmul.f32 %v2364_v21, %v2774_v2  ;;  %v1570_v30 = vpop.f32.mrb[35].mxu1 }
 0x32b   : > { %v1721_v42 = vmul.f32 %v2769_v62, %v1570_v30 }
 0x32d   : > { %v1752_v55 = vpack.c.bf16 %v1722_v34, %v1721_v42  ;;  %v2367_v56 = vpop.f32.mrb[36].mxu1 }
 0x32e   : > { %v1724_v54 = vmul.f32 %v2367_v56, %v2788_v16  ;;  %v1580_v57 = vpop.f32.mrb[37].mxu1 }
 0x32f   : > { %v1723_v27 = vmul.f32 %v1580_v57, %v2783_v8 }
 0x331   : > { %v1753_v59 = vpack.c.bf16 %v1724_v54, %v1723_v27  ;;  %v2370_v61 = vpop.f32.mrb[38].mxu1 }
 0x332   : > { %v1726_v4 = vmul.f32 %v2370_v61, %v2786_v10  ;;  %v1590_v53 = vpop.f32.mrb[39].mxu1 }
 0x333   : > { %v1725_v0 = vmul.f32 %v2781_v6, %v1590_v53 }
 0x335   : > { %v1754_v58 = vpack.c.bf16 %v1726_v4, %v1725_v0  ;;  %v2373_v63 = vpop.f32.mrb[40].mxu1 }
 0x336   : > { %v1728_v2 = vmul.f32 %v2373_v63, %v2800_v26  ;;  %v1600_v1 = vpop.f32.mrb[41].mxu1 }
 0x337   : > { %v1727_v62 = vmul.f32 %v1600_v1, %v2795_v22 }
 0x339   : > { %v1755_v5 = vpack.c.bf16 %v1728_v2, %v1727_v62  ;;  %v2376_v60 = vpop.f32.mrb[42].mxu1 }
 0x33a   : > { %v1730_v16 = vmul.f32 %v2376_v60, %v2798_v24  ;;  %v1610_v7 = vpop.f32.mrb[43].mxu1 }
 0x33b   : > { %v1729_v8 = vmul.f32 %v2793_v19, %v1610_v7 }
 0x33d   : > { %v1756_v3 = vpack.c.bf16 %v1730_v16, %v1729_v8  ;;  %v2379_v9 = vpop.f32.mrb[44].mxu1  ;;  %v1769_v8 = vld [vmem:[#allocation2 + $0x10] sm:$0xff] }
 0x33e   : > { %v1732_v10 = vmul.f32 %v2379_v9, %v2812_v35  ;;  %v1620_v23 = vpop.f32.mrb[45].mxu1 }
 0x33f   : > { %v1731_v6 = vmul.f32 %v1620_v23, %v2807_v31  ;;  %v1770_v23 = vld [vmem:[#allocation2 + $0x18] sm:$0xff] }
 0x341   : > { %v1757_v11 = vpack.c.bf16 %v1732_v10, %v1731_v6  ;;  %v2382_v25 = vpop.f32.mrb[46].mxu1 }
 0x342   : > { %v1734_v26 = vmul.f32 %v2382_v25, %v2810_v33  ;;  %v1630_v28 = vpop.f32.mrb[47].mxu1 }
 0x343   : > { %v1733_v22 = vmul.f32 %v2805_v29, %v1630_v28 }
 0x345   : > { %v1758_v21 = vpack.c.bf16 %v1734_v26, %v1733_v22  ;;  %v2385_v34 = vpop.f32.mrb[48].mxu1 }
 0x346   : > { %v1736_v24 = vmul.f32 %v2385_v34, %v2824_v39  ;;  %v1640_v30 = vpop.f32.mrb[49].mxu1 }
 0x347   : > { %v1735_v19 = vmul.f32 %v1640_v30, %v2819_v37 }
 0x349   : > { %v1759_v42 = vpack.c.bf16 %v1736_v24, %v1735_v19  ;;  %v2388_v56 = vpop.f32.mrb[50].mxu1 }
 0x34a   : > { %v1738_v35 = vmul.f32 %v2388_v56, %v2822_v38  ;;  %v1650_v54 = vpop.f32.mrb[51].mxu1 }
 0x34b   : > { %v1737_v31 = vmul.f32 %v2817_v36, %v1650_v54  ;;  %2248 = vmatprep.subr.bf16.mxu0 %v1759_v42 }
 0x34c   : > { %2249 = vmatpush3.bf16.msra.mxu0 %v1751_v32 }
 0x34d   : > { %v1760_v33 = vpack.c.bf16 %v1738_v35, %v1737_v31  ;;  %v2391_v57 = vpop.f32.mrb[52].mxu1 }
 0x34e   : > { %v1740_v29 = vmul.f32 %v2391_v57, %v2836_v44  ;;  %v1660_v27 = vpop.f32.mrb[53].mxu1 }
 0x34f   : > { %v1739_v61 = vmul.f32 %v1660_v27, %v2828_v41  ;;  %2250 = vmatprep.subr.bf16.mxu0 %v1760_v33 }
 0x350   : > { %2251 = vmatpush3.bf16.msra.mxu0 %v1752_v55 }
 0x351   : > { %v1761_v39 = vpack.c.bf16 %v1740_v29, %v1739_v61  ;;  %v2394_v37 = vpop.f32.mrb[54].mxu1 }
 0x352   : > { %v1742_v4 = vmul.f32 %v2394_v37, %v2833_v43  ;;  %v1670_v53 = vpop.f32.mrb[55].mxu1 }
 0x353   : > { %v1741_v38 = vmul.f32 %v2826_v40, %v1670_v53  ;;  %2252 = vmatprep.subr.bf16.mxu0 %v1761_v39 }
 0x354   : > { %2253 = vmatpush3.bf16.msra.mxu0 %v1753_v59 }
 0x355   : > { %v1762_v36 = vpack.c.bf16 %v1742_v4, %v1741_v38  ;;  %v2397_v32 = vpop.f32.mrb[56].mxu1 }
 0x356   : > { %v1744_v0 = vmul.f32 %v2397_v32, %v2845_v48  ;;  %v1680_v63 = vpop.f32.mrb[57].mxu1 }
 0x357   : > { %v1743_v44 = vmul.f32 %v1680_v63, %v2841_v46  ;;  %2254 = vmatprep.subr.bf16.mxu0 %v1762_v36 }
 0x358   : > { %2255 = vmatpush3.bf16.msra.mxu0 %v1754_v58 }
 0x359   : > { %v1763_v41 = vpack.c.bf16 %v1744_v0, %v1743_v44  ;;  %v2400_v55 = vpop.f32.mrb[58].mxu1 }
 0x35a   : > { %v1746_v2 = vmul.f32 %v2400_v55, %v2843_v47  ;;  %v1690_v1 = vpop.f32.mrb[59].mxu1 }
 0x35b   : > { %v1745_v43 = vmul.f32 %v2839_v45, %v1690_v1  ;;  %2256 = vmatprep.subr.bf16.mxu0 %v1763_v41 }
 0x35c   : > { %2257 = vmatpush3.bf16.msra.mxu0 %v1755_v5 }
 0x35d   : > { %v1764_v40 = vpack.c.bf16 %v1746_v2, %v1745_v43  ;;  %v2403_v59 = vpop.f32.mrb[60].mxu1 }
 0x35e   : > { %v1748_v62 = vmul.f32 %v2403_v59, %v2853_v52  ;;  %v1700_v60 = vpop.f32.mrb[61].mxu1 }
 0x35f   : > { %v1747_v48 = vmul.f32 %v1700_v60, %v2849_v50  ;;  %2258 = vmatprep.subr.bf16.mxu0 %v1764_v40  ;;  %v1768_v50 = vld [vmem:[#allocation2 + $0x8] sm:$0xff] }
 0x360   : > { %2259 = vmatpush3.bf16.msra.mxu0 %v1756_v3 }
 0x361   : > { %v1765_v46 = vpack.c.bf16 %v1748_v62, %v1747_v48  ;;  %v2406_v58 = vpop.f32.mrb[62].mxu1 }
 0x362   : > { %v1750_v16 = vmul.f32 %v2406_v58, %v2851_v51  ;;  %v1710_v7 = vpop.f32.mrb[63].mxu1 }
 0x363   : > { %v1749_v47 = vmul.f32 %v2847_v49, %v1710_v7  ;;  %2260 = vmatprep.subr.bf16.mxu0 %v1765_v46 }
 0x364   : > { %2261 = vmatpush3.bf16.msra.mxu0 %v1757_v11 }
 0x365   : > { %v1766_v45 = vpack.c.bf16 %v1750_v16, %v1749_v47 }
 0x367   : > { %2262 = vmatprep.subr.bf16.mxu0 %v1766_v45 }
 0x368   : > { %2263 = vmatpush3.bf16.msra.mxu0 %v1758_v21 }
 0x369   : > { %2407 = vmatprep.subr.msk.mxu0 %vm1490_vm5, %v1848_v12 }
 0x36b   : > { %2165 = vmatmul.mubr.msk.bf16.vlgmr.msra.gmra.mrb[32].mxu0 %vm2647_vm3, %v2552_v18 }
 0x36c   : > { %2167 = vmatprep.mubr.msk.bf16.mxu0 %vm2166_vm7, %v2552_v18  ;;  %2408 = vmatpush3.msk.msra.mxu0 %vm1490_vm5, %v1848_v12 }
 0x373   : > { %2169 = vmatmul.mubr.msk.bf16.gmra.mrb[36].mxu0 %vm2168_vm10, %v2552_v18 }
 0x43e   : > { %v2264_v13 = vpop.f32.mrb[32].mxu0 }
 0x43f   : > { %v2265_v15 = vpop.f32.mrb[33].mxu0 }
 0x440   : > { %v2266_v20 = vadd.f32 %v2265_v15, %v2264_v13  ;;  %v2267_v49 = vpop.f32.mrb[34].mxu0 }
 0x441   : > { %v2268_v51 = vpop.f32.mrb[35].mxu0 }
 0x442   : > { %v1820_v52 = vadd.f32 %v2266_v20, %v1767_v14  ;;  %v2269_v18 = vadd.f32 %v2268_v51, %v2267_v49 }
 0x444   : > { %1825 = vst.msk [vmem:[#allocation2] sm:$0xff] %vm312_vm11, %v1820_v52  ;;  %v1821_v17 = vadd.f32 %v2269_v18, %v1768_v50 }
 0x446   : > { %1826 = vst.msk [vmem:[#allocation2 + $0x8] sm:$0xff] %vm312_vm11, %v1821_v17  ;;  %v2270_v5 = vpop.f32.mrb[36].mxu0 }
 0x447   : > { %v2271_v3 = vpop.f32.mrb[37].mxu0 }
 0x448   : > { %v2272_v9 = vadd.f32 %v2271_v3, %v2270_v5  ;;  %v2273_v10 = vpop.f32.mrb[38].mxu0 }
 0x449   : > { %v2274_v6 = vpop.f32.mrb[39].mxu0 }
 0x44a   : > { %v1822_v11 = vadd.f32 %v2272_v9, %v1769_v8  ;;  %v2275_v25 = vadd.f32 %v2274_v6, %v2273_v10 }
 0x44b   : > { %v1832_v26 = vld [vmem:[#allocation2] sm:$0xff] }
 0x44c   : > { %v1836_v28 = vadd.f32 1e-16, %v1832_v26  ;;  %1827 = vst.msk [vmem:[#allocation2 + $0x10] sm:$0xff] %vm312_vm11, %v1822_v11  ;;  %v1823_v22 = vadd.f32 %v2275_v25, %v1770_v23 }
 0x44d   : > { %v1833_v21 = vld [vmem:[#allocation2 + $0x8] sm:$0xff] }
 0x44e   : > { %2516 = vrcp.f32 %v1836_v28  ;;  %1828 = vst.msk [vmem:[#allocation2 + $0x18] sm:$0xff] %vm312_vm11, %v1823_v22  ;;  %v1837_v34 = vadd.f32 1e-16, %v1833_v21 }
 0x450   : > { %2518 = vrcp.f32 %v1837_v34 }
 0x453   : > { %v1834_v24 = vld [vmem:[#allocation2 + $0x10] sm:$0xff] }
 0x454   : > { %v1838_v30 = vadd.f32 1e-16, %v1834_v24 }
 0x455   : > { %v1835_v19 = vld [vmem:[#allocation2 + $0x18] sm:$0xff] }
 0x456   : > { %2520 = vrcp.f32 %v1838_v30  ;;  %v1839_v42 = vadd.f32 1e-16, %v1835_v19 }
 0x458   : > { %v2517_v56 = vpop.eup %2516  ;;  %2522 = vrcp.f32 %v1839_v42 }
 0x459   : > { %1853 = vrot.lane.b32.xlu1 %v2517_v56, %s2553_s28 }
 0x45a   : > { %v2519_v35 = vpop.eup %2518 }
 0x45b   : > { %1855 = vrot.lane.b32.xlu0 %v2519_v35, %s2553_s28 }
 0x460   : > { %v2521_v54 = vpop.eup %2520 }
 0x461   : > { %1857 = vrot.lane.b32.xlu1 %v2521_v54, %s2553_s28 }
 0x462   : > { %v2523_v31 = vpop.eup %2522 }
 0x463   : > { %1859 = vrot.lane.b32.xlu0 %v2523_v31, %s2553_s28 }
 0x4cb   : > { %v1854_v33 = vpop.permute.xlu1 %1853 }
 0x4cc   : > { %2409 = vmatprep.mubr.msk.f32.mxu0 %vm1425_vm6, %v1854_v33 }
 0x4cd   : > { %v1856_v57 = vpop.permute.xlu0 %1855 }
 0x4ce   : > { %2410 = vmatmul.mubr.msk.f32.vlgmr.msra.gmra.mrb[40].mxu0 %vm1425_vm6, %v1856_v57 }
 0x4d3   : > { %v1858_v29 = vpop.permute.xlu1 %1857 }
 0x4d4   : > { %2412 = vmatprep.mubr.msk.f32.mxu0 %vm1425_vm6, %v1858_v29 }
 0x4d5   : > { %v1860_v27 = vpop.permute.xlu0 %1859 }
 0x4d6   : > { %2413 = vmatmul.mubr.msk.f32.gmra.mrb[42].mxu0 %vm1425_vm6, %v1860_v27 }
 0x5a1   : > { %v2411_v61 = vpop.f32.mrb[40].mxu0 }
 0x5a2   : > { %v1938_v39 = vpop.f32.mrb[41].mxu0  ;;  %v1958_v4 = vmul.f32 %v2411_v61, %v1833_v21 }
 0x5a3   : > { %v1957_v37 = vmul.f32 %v1938_v39, %v1832_v26 }
 0x5a4   : > { %1962 = vst.msk [vmem:[%s305_s9 + $0x8] sm:$0xff] %vm756_vm0, %v1958_v4 }
 0x5a5   : > { %1961 = vst.msk [vmem:[%s305_s9] sm:$0xff] %vm756_vm0, %v1957_v37 }
 0x5a9   : > { %v2414_v53 = vpop.f32.mrb[42].mxu0 }
 0x5aa   : > { %v1948_v38 = vpop.f32.mrb[43].mxu0  ;;  %v1960_v32 = vmul.f32 %v2414_v53, %v1835_v19 }
 0x5ab   : > { %v1959_v36 = vmul.f32 %v1948_v38, %v1834_v24 }
 0x5ac   : > { %1964 = vst.msk [vmem:[%s305_s9 + $0x18] sm:$0xff] %vm756_vm0, %v1960_v32 }
 0x5ad   : > { %1963 = vst.msk [vmem:[%s305_s9 + $0x10] sm:$0xff] %vm756_vm0, %v1959_v36 }
 0x5ae PF: > { %s18_s25 = sadd.s32 1, %s2546_s25   ;;  %s3086_s23 = smov %s2542_s24 }
 0x5af   : > { %p15_p5 = scmp.ge.s32.totalorder %s18_s25, 4   ;;  %s3087_s24 = smov %s3089_s5 }
 0x5b1   :  { %17 = sbr.rel (!%p15_p5) target bundleno = 3 (0x3), region = 88 }

</bundles_post_ra>
